<compile_context>
chip_gen: v7x
topology: tpu7x:2x2x1
jax: 0.10.0
libtpu: 0.0.40
codegen_flags: <defaults>
</compile_context>

<pallas_src>
import functools
import math

import jax
import jax.numpy as jnp
from jax.experimental import pallas as pl
from jax.experimental.pallas import tpu as pltpu

# ----------------------------- config (small, synthetic) ----------------------------
VOCAB = 50
MAX_POS = 32
HIDDEN = 32          # encoder.config.hidden_size
N_HEADS = 4
HEAD_DIM = HIDDEN // N_HEADS
FFN = 64
N_LAYERS = 2
CLS_HIDDEN = 256     # torch.nn.Linear(hidden, 256)
NUM_INTENT = 5
NUM_SLOT = 7
LN_EPS = 1e-5
PAD_OUT = 128        # lane-dense padded logits width per head (sliced back to 5 / 7 in JAX)

# packed parameter-vector layout (one f32 [N_VEC_ROWS, VEC_W] array)
VEC_W = 2 * CLS_HIDDEN           # 512
ROW_EMB_G = 0
ROW_EMB_B = 1
ROW_LAYER0 = 2
ROWS_PER_LAYER = 8               # bqkv, bo, b1, b2, ln1_g, ln1_b, ln2_g, ln2_b
ROW_HEAD_B1 = ROW_LAYER0 + N_LAYERS * ROWS_PER_LAYER
ROW_HEAD_B2 = ROW_HEAD_B1 + 1
N_VEC_ROWS = ROW_HEAD_B2 + 1


# ----------------------------- fused whole-model Pallas kernel ----------------------
def _joint_model_kernel(emb_ref, mask_ref, vecs_ref, wqkv_ref, wo_ref, w1_ref, w2_ref,
                        hw1_ref, hw2_ref, out_ref):
    """Whole forward pass (post embedding-gather) on VMEM-resident tiles.

    emb_ref : [B*S, H]  summed word+pos+type embeddings (f32)
    mask_ref: [B, S]    additive attention mask bias (0 / -1e9, f32)
    vecs_ref: [20, 512] all packed bias / LayerNorm vectors (f32)
    wqkv/wo/w1/w2: stacked per-layer bf16 weights; hw1/hw2: fused bf16 head weights
    out_ref : [B*S, 2*PAD_OUT]  lane-dense padded intent||slot logits
    """
    f32, bf16 = jnp.float32, jnp.bfloat16
    B, S = mask_ref.shape
    H = emb_ref.shape[1]
    G = B * N_HEADS                      # head-batched attention batch, g = h*B + b

    def vec(row, width):                 # static [1, width] slice of the packed vectors
        return vecs_ref[row:row + 1, :width]

    def layer_norm(x, g, b):
        mean = jnp.mean(x, axis=-1, keepdims=True)
        var = jnp.mean((x - mean) ** 2, axis=-1, keepdims=True)
        return (x - mean) * jax.lax.rsqrt(var + LN_EPS) * g + b

    # Embedding LayerNorm.
    x = layer_norm(emb_ref[...], vec(ROW_EMB_G, H), vec(ROW_EMB_B, H))     # [B*S, H] f32

    # Attention-mask bias, hoisted & broadcast ONCE to the head-batched shape.
    bias = jnp.broadcast_to(mask_ref[...][None, :, None, :],
                            (N_HEADS, B, S, S)).reshape(G, S, S)           # [G, S, S]

    def split_heads(t2d):
        # [B*S, H] -> [B*N_HEADS, S, Dh] with g = h*B + b.  Only lane slices, leading-dim
        # reshapes and a major-axis concat (no 4-D transposes / sub-vreg relayout chains).
        parts = [t2d[:, h * HEAD_DIM:(h + 1) * HEAD_DIM].reshape(B, S, HEAD_DIM)
                 for h in range(N_HEADS)]
        return jnp.concatenate(parts, axis=0)

    for l in range(N_LAYERS):
        r = ROW_LAYER0 + l * ROWS_PER_LAYER

        # ---- self-attention: fused QKV matmul, ALL heads in one batched softmax ----
        qkv = jnp.dot(x.astype(bf16), wqkv_ref[l],
                      preferred_element_type=f32) + vec(r + 0, 3 * H)      # [B*S, 3H]
        q = split_heads(qkv[:, :H]).astype(bf16)          # 1/sqrt(Dh) folded into wq/bq
        k = split_heads(qkv[:, H:2 * H]).astype(bf16)
        v = split_heads(qkv[:, 2 * H:3 * H]).astype(bf16)

        s = jnp.einsum("gqd,gkd->gqk", q, k, preferred_element_type=f32) + bias
        s = s - jnp.max(s, axis=-1, keepdims=True)
        p = jnp.exp(s)
        p = p * pl.reciprocal(jnp.sum(p, axis=-1, keepdims=True), approx=True)
        ctx = jnp.einsum("gqk,gkd->gqd", p.astype(bf16), v,
                         preferred_element_type=f32)                       # [G, S, Dh]

        # merge heads via a head-batched projection + sum over heads (single einsum,
        # no per-head Python accumulator, no lane-dim concat/transpose needed)
        ctx_b = ctx.reshape(N_HEADS, B * S, HEAD_DIM).astype(bf16)
        wo_r = wo_ref[l].reshape(N_HEADS, HEAD_DIM, H)
        attn = jnp.sum(jnp.einsum("hnd,hdo->hno", ctx_b, wo_r,
                                  preferred_element_type=f32), axis=0) + vec(r + 1, H)

        # residual + post-LN (RoBERTa style)
        x = layer_norm(x + attn, vec(r + 4, H), vec(r + 5, H))

        # ---- feed-forward ----
        ff = jnp.dot(x.astype(bf16), w1_ref[l], preferred_element_type=f32) + vec(r + 2, FFN)
        # TODO(synk): PyTorch nn.GELU / HF XLM-R default to exact erf GELU; tanh
        #             approximation kept for guaranteed Mosaic lowering.
        ff = jax.nn.gelu(ff, approximate=True)
        ff = jnp.dot(ff.astype(bf16), w2_ref[l], preferred_element_type=f32) + vec(r + 3, H)
        x = layer_norm(x + ff, vec(r + 6, H), vec(r + 7, H))

    # ---- fused intent+slot heads: one [H,512] matmul+ReLU, one block-diag [512,256] ----
    # Dropout(0.3) is identity at inference.  Intent logits are computed for all tokens and
    # the CLS row sliced in JAX (negligible at S=8).
    # TODO(synk): gather CLS rows in-kernel before the head matmuls when S grows.
    h = jnp.dot(x.astype(bf16), hw1_ref[...],
                preferred_element_type=f32) + vec(ROW_HEAD_B1, 2 * CLS_HIDDEN)
    h = jnp.maximum(h, 0.0)
    logits = jnp.dot(h.astype(bf16), hw2_ref[...],
                     preferred_element_type=f32) + vec(ROW_HEAD_B2, 2 * PAD_OUT)
    out_ref[...] = logits.astype(out_ref.dtype)


# ----------------------------- JAX-side glue -----------------------------------------
def forward(packed, input_ids, attention_mask):
    B, S = input_ids.shape
    # TODO(synk): HF XLM-R derives position ids from the attention mask (cumsum over
    #             non-pad tokens); fixed arange(S)+2 kept to match the in-file reference.
    pos_ids = jnp.arange(S, dtype=jnp.int32) + 2
    emb = (jnp.take(packed["word_emb"], input_ids, axis=0)
           + packed["pos_emb"][pos_ids][None, :, :]
           + packed["type_emb"][0][None, None, :])                       # [B, S, H]
    emb2 = emb.reshape(B * S, HIDDEN).astype(jnp.float32)
    mask_bias = ((1.0 - attention_mask.astype(jnp.float32)) * -1e9)      # [B, S]

    inputs = (emb2, mask_bias, packed["vecs"], packed["wqkv"], packed["wo"],
              packed["w1"], packed["w2"], packed["hw1"], packed["hw2"])
    vmem = pl.BlockSpec(memory_space=pltpu.MemorySpace.VMEM)             # whole-array VMEM
    logits = pl.pallas_call(
        _joint_model_kernel,
        out_shape=jax.ShapeDtypeStruct((B * S, 2 * PAD_OUT), jnp.float32),
        in_specs=[vmem] * len(inputs),
        out_specs=vmem,
    )(*inputs)

    logits = logits.reshape(B, S, 2 * PAD_OUT)
    intent_logits = logits[:, 0, :NUM_INTENT]                            # [B, 5]
    slot_logits = logits[:, :, PAD_OUT:PAD_OUT + NUM_SLOT]               # [B, S, 7]
    return {"intent_logits": intent_logits, "slot_logits": slot_logits}


# ----------------------------- parameter packing -------------------------------------
def _pad_last(x, n):
    return jnp.pad(x, [(0, 0)] * (x.ndim - 1) + [(0, n - x.shape[-1])])


def pack_params(p):
    """Stack per-layer weights, fuse QKV and both heads, bf16-cast MXU weights, and pack
    every small bias / LayerNorm vector into one f32 [N_VEC_ROWS, VEC_W] array."""
    bf16 = jnp.bfloat16
    scale = 1.0 / math.sqrt(HEAD_DIM)     # folded into the Q projection at pack time

    def row(v):
        v = v.reshape(-1)
        return jnp.pad(v, (0, VEC_W - v.shape[0]))

    rows = [row(p["ln_emb_g"]), row(p["ln_emb_b"])]
    for lp in p["layers"]:
        rows += [row(jnp.concatenate([lp["bq"] * scale, lp["bk"], lp["bv"]])),
                 row(lp["bo"]), row(lp["b1"]), row(lp["b2"]),
                 row(lp["ln1_g"]), row(lp["ln1_b"]), row(lp["ln2_g"]), row(lp["ln2_b"])]
    rows += [row(jnp.concatenate([p["intent"]["b1"], p["slot"]["b1"]])),
             row(jnp.concatenate([jnp.pad(p["intent"]["b2"], (0, PAD_OUT - NUM_INTENT)),
                                  jnp.pad(p["slot"]["b2"], (0, PAD_OUT - NUM_SLOT))]))]
    vecs = jnp.stack(rows, axis=0).astype(jnp.float32)
    assert vecs.shape == (N_VEC_ROWS, VEC_W)

    # bf16 MXU weights (f32 x f32 lowers to multi-pass bf16 emulation on v5e/v6e/v7x).
    wqkv = jnp.stack([jnp.concatenate([lp["wq"] * scale, lp["wk"], lp["wv"]], axis=1)
                      for lp in p["layers"]]).astype(bf16)               # [L, H, 3H]
    wo = jnp.stack([lp["wo"] for lp in p["layers"]]).astype(bf16)        # [L, H, H]
    w1 = jnp.stack([lp["w1"] for lp in p["layers"]]).astype(bf16)        # [L, H, FFN]
    w2 = jnp.stack([lp["w2"] for lp in p["layers"]]).astype(bf16)        # [L, FFN, H]

    # fused classifier heads: first layers concatenated, second layers block-diagonal
    hw1 = jnp.concatenate([p["intent"]["w1"], p["slot"]["w1"]], axis=1).astype(bf16)  # [H,512]
    zeros = jnp.zeros((CLS_HIDDEN, PAD_OUT), jnp.float32)
    hw2 = jnp.concatenate(
        [jnp.concatenate([_pad_last(p["intent"]["w2"], PAD_OUT), zeros], axis=1),
         jnp.concatenate([zeros, _pad_last(p["slot"]["w2"], PAD_OUT)], axis=1)],
        axis=0).astype(bf16)                                                           # [512,256]

    return dict(word_emb=p["word_emb"], pos_emb=p["pos_emb"], type_emb=p["type_emb"],
                vecs=vecs, wqkv=wqkv, wo=wo, w1=w1, w2=w2, hw1=hw1, hw2=hw2)


# ----------------------------- deterministic parameter init -------------------------
def init_params(key):
    ks = iter(jax.random.split(key, 256))
    n = lambda *shape: (0.02 * jax.random.normal(next(ks), shape)).astype(jnp.float32)
    z = lambda *shape: jnp.zeros(shape, jnp.float32)
    o = lambda *shape: jnp.ones(shape, jnp.float32)

    def layer():
        return dict(
            wq=n(HIDDEN, HIDDEN), bq=z(HIDDEN),
            wk=n(HIDDEN, HIDDEN), bk=z(HIDDEN),
            wv=n(HIDDEN, HIDDEN), bv=z(HIDDEN),
            wo=n(HIDDEN, HIDDEN), bo=z(HIDDEN),
            ln1_g=o(HIDDEN), ln1_b=z(HIDDEN),
            w1=n(HIDDEN, FFN), b1=z(FFN),
            w2=n(FFN, HIDDEN), b2=z(HIDDEN),
            ln2_g=o(HIDDEN), ln2_b=z(HIDDEN),
        )

    return dict(
        word_emb=n(VOCAB, HIDDEN),
        pos_emb=n(MAX_POS, HIDDEN),
        type_emb=n(2, HIDDEN),
        ln_emb_g=o(HIDDEN), ln_emb_b=z(HIDDEN),
        layers=[layer() for _ in range(N_LAYERS)],
        intent=dict(w1=n(HIDDEN, CLS_HIDDEN), b1=z(CLS_HIDDEN),
                    w2=n(CLS_HIDDEN, NUM_INTENT), b2=z(NUM_INTENT)),
        slot=dict(w1=n(HIDDEN, CLS_HIDDEN), b1=z(CLS_HIDDEN),
                  w2=n(CLS_HIDDEN, NUM_SLOT), b2=z(NUM_SLOT)),
    )


# ----------------------------- pure-JAX reference (for correctness check) ------------
def reference_forward(params, input_ids, attention_mask):
    B, S = input_ids.shape
    pos_ids = jnp.arange(S, dtype=jnp.int32) + 2
    x = (jnp.take(params["word_emb"], input_ids, axis=0)
         + params["pos_emb"][pos_ids][None, :, :]
         + params["type_emb"][0][None, None, :])

    def ln(x, g, b):
        m = x.mean(-1, keepdims=True)
        v = ((x - m) ** 2).mean(-1, keepdims=True)
        return (x - m) * jax.lax.rsqrt(v + LN_EPS) * g + b

    x = ln(x, params["ln_emb_g"], params["ln_emb_b"])
    bias = (1.0 - attention_mask.astype(jnp.float32)) * -1e9            # [B, S]

    for lp in params["layers"]:
        q = x @ lp["wq"] + lp["bq"]
        k = x @ lp["wk"] + lp["bk"]
        v = x @ lp["wv"] + lp["bv"]
        split = lambda t: t.reshape(B, S, N_HEADS, HEAD_DIM).transpose(0, 2, 1, 3)
        qh, kh, vh = split(q), split(k), split(v)
        s = (jnp.einsum("bhqd,bhkd->bhqk", qh, kh) / math.sqrt(HEAD_DIM)
             + bias[:, None, None, :])
        p = jax.nn.softmax(s, axis=-1)
        ctx = jnp.einsum("bhqk,bhkd->bhqd", p, vh).transpose(0, 2, 1, 3).reshape(B, S, HIDDEN)
        attn = ctx @ lp["wo"] + lp["bo"]
        x = ln(x + attn, lp["ln1_g"], lp["ln1_b"])
        ff = jax.nn.gelu(x @ lp["w1"] + lp["b1"], approximate=True) @ lp["w2"] + lp["b2"]
        x = ln(x + ff, lp["ln2_g"], lp["ln2_b"])

    cls = x[:, 0, :]
    intent = (jnp.maximum(cls @ params["intent"]["w1"] + params["intent"]["b1"], 0.0)
              @ params["intent"]["w2"] + params["intent"]["b2"])
    slot = (jnp.maximum(x @ params["slot"]["w1"] + params["slot"]["b1"], 0.0)
            @ params["slot"]["w2"] + params["slot"]["b2"])
    return {"intent_logits": intent, "slot_logits": slot}


# ----------------------------- main --------------------------------------------------
if __name__ == "__main__":
    key = jax.random.PRNGKey(0)
    params = init_params(key)
    packed = pack_params(params)

    B, S = 2, 8
    input_ids = jax.random.randint(jax.random.fold_in(key, 1), (B, S), 0, VOCAB, dtype=jnp.int32)
    attention_mask = jnp.array([[1, 1, 1, 1, 1, 1, 1, 1],
                                [1, 1, 1, 1, 1, 0, 0, 0]], dtype=jnp.int32)

    fwd = jax.jit(functools.partial(forward, packed))
    out = fwd(input_ids, attention_mask)
    jax.block_until_ready(out)

    assert out["intent_logits"].shape == (B, NUM_INTENT)
    assert out["slot_logits"].shape == (B, S, NUM_SLOT)
    assert out["intent_logits"].dtype == jnp.float32
    assert out["slot_logits"].dtype == jnp.float32

    # Numerical check against a pure-JAX f32 reference of the same math (bf16 MXU operands
    # in the kernel are comfortably inside this tolerance at these magnitudes).
    with jax.default_matmul_precision("float32"):
        ref = reference_forward(params, input_ids, attention_mask)
    for name in ("intent_logits", "slot_logits"):
        err = float(jnp.max(jnp.abs(out[name] - ref[name])))
        assert err < 2e-2, f"{name} mismatch vs reference: max abs err {err}"

    # TODO(synk): pretrained XLM-R weights / tokenizer not loadable here; encoder uses
    # deterministic synthetic weights with identical forward-pass structure.
    print("KERNEL_OK")
</pallas_src>

<mosaic_0001>
module attributes {stable_mosaic.version = 11 : i64} {
  func.func @_joint_model_kernel(%arg0: memref<16x32xf32, #tpu.memory_space<vmem>>, %arg1: memref<2x8xf32, #tpu.memory_space<vmem>>, %arg2: memref<20x512xf32, #tpu.memory_space<vmem>>, %arg3: memref<2x32x96xbf16, #tpu.memory_space<vmem>>, %arg4: memref<2x32x32xbf16, #tpu.memory_space<vmem>>, %arg5: memref<2x32x64xbf16, #tpu.memory_space<vmem>>, %arg6: memref<2x64x32xbf16, #tpu.memory_space<vmem>>, %arg7: memref<32x512xbf16, #tpu.memory_space<vmem>>, %arg8: memref<512x256xbf16, #tpu.memory_space<vmem>>, %arg9: memref<16x256xf32, #tpu.memory_space<vmem>>) attributes {dimension_semantics = [], scalar_prefetch = 0 : i64, scratch_operands = 0 : i64, tpu.core_type = #tpu.core_type<tc>} {
    %c0 = arith.constant 0 : index
    %c0_0 = arith.constant 0 : index
    %0 = vector.load %arg0[%c0, %c0_0] : memref<16x32xf32, #tpu.memory_space<vmem>>, vector<16x32xf32>
    %c0_1 = arith.constant 0 : index
    %c0_2 = arith.constant 0 : index
    %1 = vector.load %arg2[%c0_1, %c0_2] : memref<20x512xf32, #tpu.memory_space<vmem>>, vector<1x32xf32>
    %c1 = arith.constant 1 : index
    %c0_3 = arith.constant 0 : index
    %2 = vector.load %arg2[%c1, %c0_3] : memref<20x512xf32, #tpu.memory_space<vmem>>, vector<1x32xf32>
    %cst = arith.constant dense<0.000000e+00> : vector<16xf32>
    %3 = vector.multi_reduction <add>, %0, %cst [1] : vector<16x32xf32> to vector<16xf32>
    %4 = vector.shape_cast %3 : vector<16xf32> to vector<16x1xf32>
    %cst_4 = arith.constant 3.200000e+01 : f32
    %5 = vector.broadcast %cst_4 : f32 to vector<16x1xf32>
    %6 = arith.divf %4, %5 : vector<16x1xf32>
    %7 = vector.broadcast %6 : vector<16x1xf32> to vector<16x32xf32>
    %8 = arith.subf %0, %7 : vector<16x32xf32>
    %9 = arith.mulf %8, %8 : vector<16x32xf32>
    %cst_5 = arith.constant dense<0.000000e+00> : vector<16xf32>
    %10 = vector.multi_reduction <add>, %9, %cst_5 [1] : vector<16x32xf32> to vector<16xf32>
    %11 = vector.shape_cast %10 : vector<16xf32> to vector<16x1xf32>
    %cst_6 = arith.constant 3.200000e+01 : f32
    %12 = vector.broadcast %cst_6 : f32 to vector<16x1xf32>
    %13 = arith.divf %11, %12 : vector<16x1xf32>
    %14 = vector.broadcast %6 : vector<16x1xf32> to vector<16x32xf32>
    %15 = arith.subf %0, %14 : vector<16x32xf32>
    %cst_7 = arith.constant 9.99999974E-6 : f32
    %16 = vector.broadcast %cst_7 : f32 to vector<16x1xf32>
    %17 = arith.addf %13, %16 : vector<16x1xf32>
    %18 = math.rsqrt %17 : vector<16x1xf32>
    %19 = vector.broadcast %18 : vector<16x1xf32> to vector<16x32xf32>
    %20 = arith.mulf %15, %19 : vector<16x32xf32>
    %21 = vector.broadcast %1 : vector<1x32xf32> to vector<16x32xf32>
    %22 = arith.mulf %20, %21 : vector<16x32xf32>
    %23 = vector.broadcast %2 : vector<1x32xf32> to vector<16x32xf32>
    %24 = arith.addf %22, %23 : vector<16x32xf32>
    %c0_8 = arith.constant 0 : index
    %c0_9 = arith.constant 0 : index
    %25 = vector.load %arg1[%c0_8, %c0_9] : memref<2x8xf32, #tpu.memory_space<vmem>>, vector<2x8xf32>
    %26 = vector.shape_cast %25 : vector<2x8xf32> to vector<1x2x1x8xf32>
    %27 = vector.shape_cast %26 : vector<1x2x1x8xf32> to vector<1x2x1x8xf32>
    %28 = vector.broadcast %27 : vector<1x2x1x8xf32> to vector<4x2x8x8xf32>
    %29 = vector.shape_cast %28 : vector<4x2x8x8xf32> to vector<8x8x8xf32>
    %30 = arith.truncf %24 : vector<16x32xf32> to vector<16x32xbf16>
    %c0_10 = arith.constant 0 : index
    %c0_11 = arith.constant 0 : index
    %c0_12 = arith.constant 0 : index
    %31 = vector.load %arg3[%c0_10, %c0_11, %c0_12] : memref<2x32x96xbf16, #tpu.memory_space<vmem>>, vector<1x32x96xbf16>
    %32 = vector.shape_cast %31 : vector<1x32x96xbf16> to vector<32x96xbf16>
    %cst_13 = arith.constant dense<0.000000e+00> : vector<16x96xf32>
    %33 = tpu.matmul %30, %32, %cst_13 {dimension_numbers = #tpu.dot_dimension_numbers<[1], [0], [0], [1], [0, 0, 1, 1], [], []>} : vector<16x32xbf16>, vector<32x96xbf16>, vector<16x96xf32> -> vector<16x96xf32>
    %c2 = arith.constant 2 : index
    %c0_14 = arith.constant 0 : index
    %34 = vector.load %arg2[%c2, %c0_14] : memref<20x512xf32, #tpu.memory_space<vmem>>, vector<1x96xf32>
    %35 = vector.broadcast %34 : vector<1x96xf32> to vector<16x96xf32>
    %36 = arith.addf %33, %35 : vector<16x96xf32>
    %37 = vector.extract_strided_slice %36 {offsets = [0, 0], sizes = [16, 32], strides = [1, 1]} : vector<16x96xf32> to vector<16x32xf32>
    %38 = vector.extract_strided_slice %37 {offsets = [0, 0], sizes = [16, 8], strides = [1, 1]} : vector<16x32xf32> to vector<16x8xf32>
    %39 = vector.shape_cast %38 : vector<16x8xf32> to vector<2x8x8xf32>
    %40 = vector.extract_strided_slice %37 {offsets = [0, 8], sizes = [16, 8], strides = [1, 1]} : vector<16x32xf32> to vector<16x8xf32>
    %41 = vector.shape_cast %40 : vector<16x8xf32> to vector<2x8x8xf32>
    %42 = vector.extract_strided_slice %37 {offsets = [0, 16], sizes = [16, 8], strides = [1, 1]} : vector<16x32xf32> to vector<16x8xf32>
    %43 = vector.shape_cast %42 : vector<16x8xf32> to vector<2x8x8xf32>
    %44 = vector.extract_strided_slice %37 {offsets = [0, 24], sizes = [16, 8], strides = [1, 1]} : vector<16x32xf32> to vector<16x8xf32>
    %45 = vector.shape_cast %44 : vector<16x8xf32> to vector<2x8x8xf32>
    %46 = tpu.concatenate %39, %41, %43, %45 in 0 : vector<2x8x8xf32>, vector<2x8x8xf32>, vector<2x8x8xf32>, vector<2x8x8xf32> -> vector<8x8x8xf32>
    %47 = arith.truncf %46 : vector<8x8x8xf32> to vector<8x8x8xbf16>
    %48 = vector.extract_strided_slice %36 {offsets = [0, 32], sizes = [16, 32], strides = [1, 1]} : vector<16x96xf32> to vector<16x32xf32>
    %49 = vector.extract_strided_slice %48 {offsets = [0, 0], sizes = [16, 8], strides = [1, 1]} : vector<16x32xf32> to vector<16x8xf32>
    %50 = vector.shape_cast %49 : vector<16x8xf32> to vector<2x8x8xf32>
    %51 = vector.extract_strided_slice %48 {offsets = [0, 8], sizes = [16, 8], strides = [1, 1]} : vector<16x32xf32> to vector<16x8xf32>
    %52 = vector.shape_cast %51 : vector<16x8xf32> to vector<2x8x8xf32>
    %53 = vector.extract_strided_slice %48 {offsets = [0, 16], sizes = [16, 8], strides = [1, 1]} : vector<16x32xf32> to vector<16x8xf32>
    %54 = vector.shape_cast %53 : vector<16x8xf32> to vector<2x8x8xf32>
    %55 = vector.extract_strided_slice %48 {offsets = [0, 24], sizes = [16, 8], strides = [1, 1]} : vector<16x32xf32> to vector<16x8xf32>
    %56 = vector.shape_cast %55 : vector<16x8xf32> to vector<2x8x8xf32>
    %57 = tpu.concatenate %50, %52, %54, %56 in 0 : vector<2x8x8xf32>, vector<2x8x8xf32>, vector<2x8x8xf32>, vector<2x8x8xf32> -> vector<8x8x8xf32>
    %58 = arith.truncf %57 : vector<8x8x8xf32> to vector<8x8x8xbf16>
    %59 = vector.extract_strided_slice %36 {offsets = [0, 64], sizes = [16, 32], strides = [1, 1]} : vector<16x96xf32> to vector<16x32xf32>
    %60 = vector.extract_strided_slice %59 {offsets = [0, 0], sizes = [16, 8], strides = [1, 1]} : vector<16x32xf32> to vector<16x8xf32>
    %61 = vector.shape_cast %60 : vector<16x8xf32> to vector<2x8x8xf32>
    %62 = vector.extract_strided_slice %59 {offsets = [0, 8], sizes = [16, 8], strides = [1, 1]} : vector<16x32xf32> to vector<16x8xf32>
    %63 = vector.shape_cast %62 : vector<16x8xf32> to vector<2x8x8xf32>
    %64 = vector.extract_strided_slice %59 {offsets = [0, 16], sizes = [16, 8], strides = [1, 1]} : vector<16x32xf32> to vector<16x8xf32>
    %65 = vector.shape_cast %64 : vector<16x8xf32> to vector<2x8x8xf32>
    %66 = vector.extract_strided_slice %59 {offsets = [0, 24], sizes = [16, 8], strides = [1, 1]} : vector<16x32xf32> to vector<16x8xf32>
    %67 = vector.shape_cast %66 : vector<16x8xf32> to vector<2x8x8xf32>
    %68 = tpu.concatenate %61, %63, %65, %67 in 0 : vector<2x8x8xf32>, vector<2x8x8xf32>, vector<2x8x8xf32>, vector<2x8x8xf32> -> vector<8x8x8xf32>
    %69 = arith.truncf %68 : vector<8x8x8xf32> to vector<8x8x8xbf16>
    "tpu.trace_start"() <{level = 10 : i32, message = "gqd,gkd->gqk"}> : () -> ()
    %cst_15 = arith.constant dense<0.000000e+00> : vector<8x8x8xf32>
    %70 = tpu.matmul %47, %58, %cst_15 {dimension_numbers = #tpu.dot_dimension_numbers<[2], [2], [1], [1], [0, 0, 0, 1, 1, 1], [0], [0]>} : vector<8x8x8xbf16>, vector<8x8x8xbf16>, vector<8x8x8xf32> -> vector<8x8x8xf32>
    "tpu.trace_stop"() : () -> ()
    %71 = arith.addf %70, %29 : vector<8x8x8xf32>
    %cst_16 = arith.constant dense<0xFF800000> : vector<8x8xf32>
    %72 = vector.multi_reduction <maximumf>, %71, %cst_16 [2] : vector<8x8x8xf32> to vector<8x8xf32>
    %73 = vector.shape_cast %72 : vector<8x8xf32> to vector<8x8x1xf32>
    %74 = vector.broadcast %73 : vector<8x8x1xf32> to vector<8x8x8xf32>
    %75 = arith.subf %71, %74 : vector<8x8x8xf32>
    %76 = math.exp %75 : vector<8x8x8xf32>
    %cst_17 = arith.constant dense<0.000000e+00> : vector<8x8xf32>
    %77 = vector.multi_reduction <add>, %76, %cst_17 [2] : vector<8x8x8xf32> to vector<8x8xf32>
    %78 = vector.shape_cast %77 : vector<8x8xf32> to vector<8x8x1xf32>
    %79 = tpu.reciprocal %78 {approx = true} : vector<8x8x1xf32> -> vector<8x8x1xf32>
    %80 = vector.broadcast %79 : vector<8x8x1xf32> to vector<8x8x8xf32>
    %81 = arith.mulf %76, %80 : vector<8x8x8xf32>
    %82 = arith.truncf %81 : vector<8x8x8xf32> to vector<8x8x8xbf16>
    "tpu.trace_start"() <{level = 10 : i32, message = "gqk,gkd->gqd"}> : () -> ()
    %cst_18 = arith.constant dense<0.000000e+00> : vector<8x8x8xf32>
    %83 = tpu.matmul %82, %69, %cst_18 {dimension_numbers = #tpu.dot_dimension_numbers<[2], [1], [1], [2], [0, 0, 0, 1, 1, 2], [0], [0]>} : vector<8x8x8xbf16>, vector<8x8x8xbf16>, vector<8x8x8xf32> -> vector<8x8x8xf32>
    "tpu.trace_stop"() : () -> ()
    %84 = vector.shape_cast %83 : vector<8x8x8xf32> to vector<4x16x8xf32>
    %85 = arith.truncf %84 : vector<4x16x8xf32> to vector<4x16x8xbf16>
    %c0_19 = arith.constant 0 : index
    %c0_20 = arith.constant 0 : index
    %c0_21 = arith.constant 0 : index
    %86 = vector.load %arg4[%c0_19, %c0_20, %c0_21] : memref<2x32x32xbf16, #tpu.memory_space<vmem>>, vector<1x32x32xbf16>
    %87 = vector.shape_cast %86 : vector<1x32x32xbf16> to vector<32x32xbf16>
    %88 = vector.shape_cast %87 : vector<32x32xbf16> to vector<4x8x32xbf16>
    "tpu.trace_start"() <{level = 10 : i32, message = "hnd,hdo->hno"}> : () -> ()
    %cst_22 = arith.constant dense<0.000000e+00> : vector<4x16x32xf32>
    %89 = tpu.matmul %85, %88, %cst_22 {dimension_numbers = #tpu.dot_dimension_numbers<[2], [1], [1], [2], [0, 0, 0, 1, 1, 2], [0], [0]>} : vector<4x16x8xbf16>, vector<4x8x32xbf16>, vector<4x16x32xf32> -> vector<4x16x32xf32>
    "tpu.trace_stop"() : () -> ()
    %cst_23 = arith.constant dense<0.000000e+00> : vector<16x32xf32>
    %90 = vector.multi_reduction <add>, %89, %cst_23 [0] : vector<4x16x32xf32> to vector<16x32xf32>
    %c3 = arith.constant 3 : index
    %c0_24 = arith.constant 0 : index
    %91 = vector.load %arg2[%c3, %c0_24] : memref<20x512xf32, #tpu.memory_space<vmem>>, vector<1x32xf32>
    %92 = vector.broadcast %91 : vector<1x32xf32> to vector<16x32xf32>
    %93 = arith.addf %90, %92 : vector<16x32xf32>
    %94 = arith.addf %24, %93 : vector<16x32xf32>
    %c6 = arith.constant 6 : index
    %c0_25 = arith.constant 0 : index
    %95 = vector.load %arg2[%c6, %c0_25] : memref<20x512xf32, #tpu.memory_space<vmem>>, vector<1x32xf32>
    %c7 = arith.constant 7 : index
    %c0_26 = arith.constant 0 : index
    %96 = vector.load %arg2[%c7, %c0_26] : memref<20x512xf32, #tpu.memory_space<vmem>>, vector<1x32xf32>
    %cst_27 = arith.constant dense<0.000000e+00> : vector<16xf32>
    %97 = vector.multi_reduction <add>, %94, %cst_27 [1] : vector<16x32xf32> to vector<16xf32>
    %98 = vector.shape_cast %97 : vector<16xf32> to vector<16x1xf32>
    %cst_28 = arith.constant 3.200000e+01 : f32
    %99 = vector.broadcast %cst_28 : f32 to vector<16x1xf32>
    %100 = arith.divf %98, %99 : vector<16x1xf32>
    %101 = vector.broadcast %100 : vector<16x1xf32> to vector<16x32xf32>
    %102 = arith.subf %94, %101 : vector<16x32xf32>
    %103 = arith.mulf %102, %102 : vector<16x32xf32>
    %cst_29 = arith.constant dense<0.000000e+00> : vector<16xf32>
    %104 = vector.multi_reduction <add>, %103, %cst_29 [1] : vector<16x32xf32> to vector<16xf32>
    %105 = vector.shape_cast %104 : vector<16xf32> to vector<16x1xf32>
    %cst_30 = arith.constant 3.200000e+01 : f32
    %106 = vector.broadcast %cst_30 : f32 to vector<16x1xf32>
    %107 = arith.divf %105, %106 : vector<16x1xf32>
    %108 = vector.broadcast %100 : vector<16x1xf32> to vector<16x32xf32>
    %109 = arith.subf %94, %108 : vector<16x32xf32>
    %cst_31 = arith.constant 9.99999974E-6 : f32
    %110 = vector.broadcast %cst_31 : f32 to vector<16x1xf32>
    %111 = arith.addf %107, %110 : vector<16x1xf32>
    %112 = math.rsqrt %111 : vector<16x1xf32>
    %113 = vector.broadcast %112 : vector<16x1xf32> to vector<16x32xf32>
    %114 = arith.mulf %109, %113 : vector<16x32xf32>
    %115 = vector.broadcast %95 : vector<1x32xf32> to vector<16x32xf32>
    %116 = arith.mulf %114, %115 : vector<16x32xf32>
    %117 = vector.broadcast %96 : vector<1x32xf32> to vector<16x32xf32>
    %118 = arith.addf %116, %117 : vector<16x32xf32>
    %119 = arith.truncf %118 : vector<16x32xf32> to vector<16x32xbf16>
    %c0_32 = arith.constant 0 : index
    %c0_33 = arith.constant 0 : index
    %c0_34 = arith.constant 0 : index
    %120 = vector.load %arg5[%c0_32, %c0_33, %c0_34] : memref<2x32x64xbf16, #tpu.memory_space<vmem>>, vector<1x32x64xbf16>
    %121 = vector.shape_cast %120 : vector<1x32x64xbf16> to vector<32x64xbf16>
    %cst_35 = arith.constant dense<0.000000e+00> : vector<16x64xf32>
    %122 = tpu.matmul %119, %121, %cst_35 {dimension_numbers = #tpu.dot_dimension_numbers<[1], [0], [0], [1], [0, 0, 1, 1], [], []>} : vector<16x32xbf16>, vector<32x64xbf16>, vector<16x64xf32> -> vector<16x64xf32>
    %c4 = arith.constant 4 : index
    %c0_36 = arith.constant 0 : index
    %123 = vector.load %arg2[%c4, %c0_36] : memref<20x512xf32, #tpu.memory_space<vmem>>, vector<1x64xf32>
    %124 = vector.broadcast %123 : vector<1x64xf32> to vector<16x64xf32>
    %125 = arith.addf %122, %124 : vector<16x64xf32>
    %126 = arith.mulf %125, %125 : vector<16x64xf32>
    %127 = arith.mulf %125, %126 : vector<16x64xf32>
    %cst_37 = arith.constant 4.471500e-02 : f32
    %128 = vector.broadcast %cst_37 : f32 to vector<16x64xf32>
    %129 = arith.mulf %128, %127 : vector<16x64xf32>
    %130 = arith.addf %125, %129 : vector<16x64xf32>
    %cst_38 = arith.constant 0.797884583 : f32
    %131 = vector.broadcast %cst_38 : f32 to vector<16x64xf32>
    %132 = arith.mulf %131, %130 : vector<16x64xf32>
    %133 = math.tanh %132 : vector<16x64xf32>
    %cst_39 = arith.constant 1.000000e+00 : f32
    %134 = vector.broadcast %cst_39 : f32 to vector<16x64xf32>
    %135 = arith.addf %134, %133 : vector<16x64xf32>
    %cst_40 = arith.constant 5.000000e-01 : f32
    %136 = vector.broadcast %cst_40 : f32 to vector<16x64xf32>
    %137 = arith.mulf %136, %135 : vector<16x64xf32>
    %138 = arith.mulf %125, %137 : vector<16x64xf32>
    %139 = arith.truncf %138 : vector<16x64xf32> to vector<16x64xbf16>
    %c0_41 = arith.constant 0 : index
    %c0_42 = arith.constant 0 : index
    %c0_43 = arith.constant 0 : index
    %140 = vector.load %arg6[%c0_41, %c0_42, %c0_43] : memref<2x64x32xbf16, #tpu.memory_space<vmem>>, vector<1x64x32xbf16>
    %141 = vector.shape_cast %140 : vector<1x64x32xbf16> to vector<64x32xbf16>
    %cst_44 = arith.constant dense<0.000000e+00> : vector<16x32xf32>
    %142 = tpu.matmul %139, %141, %cst_44 {dimension_numbers = #tpu.dot_dimension_numbers<[1], [0], [0], [1], [0, 0, 1, 1], [], []>} : vector<16x64xbf16>, vector<64x32xbf16>, vector<16x32xf32> -> vector<16x32xf32>
    %c5 = arith.constant 5 : index
    %c0_45 = arith.constant 0 : index
    %143 = vector.load %arg2[%c5, %c0_45] : memref<20x512xf32, #tpu.memory_space<vmem>>, vector<1x32xf32>
    %144 = vector.broadcast %143 : vector<1x32xf32> to vector<16x32xf32>
    %145 = arith.addf %142, %144 : vector<16x32xf32>
    %146 = arith.addf %118, %145 : vector<16x32xf32>
    %c8 = arith.constant 8 : index
    %c0_46 = arith.constant 0 : index
    %147 = vector.load %arg2[%c8, %c0_46] : memref<20x512xf32, #tpu.memory_space<vmem>>, vector<1x32xf32>
    %c9 = arith.constant 9 : index
    %c0_47 = arith.constant 0 : index
    %148 = vector.load %arg2[%c9, %c0_47] : memref<20x512xf32, #tpu.memory_space<vmem>>, vector<1x32xf32>
    %cst_48 = arith.constant dense<0.000000e+00> : vector<16xf32>
    %149 = vector.multi_reduction <add>, %146, %cst_48 [1] : vector<16x32xf32> to vector<16xf32>
    %150 = vector.shape_cast %149 : vector<16xf32> to vector<16x1xf32>
    %cst_49 = arith.constant 3.200000e+01 : f32
    %151 = vector.broadcast %cst_49 : f32 to vector<16x1xf32>
    %152 = arith.divf %150, %151 : vector<16x1xf32>
    %153 = vector.broadcast %152 : vector<16x1xf32> to vector<16x32xf32>
    %154 = arith.subf %146, %153 : vector<16x32xf32>
    %155 = arith.mulf %154, %154 : vector<16x32xf32>
    %cst_50 = arith.constant dense<0.000000e+00> : vector<16xf32>
    %156 = vector.multi_reduction <add>, %155, %cst_50 [1] : vector<16x32xf32> to vector<16xf32>
    %157 = vector.shape_cast %156 : vector<16xf32> to vector<16x1xf32>
    %cst_51 = arith.constant 3.200000e+01 : f32
    %158 = vector.broadcast %cst_51 : f32 to vector<16x1xf32>
    %159 = arith.divf %157, %158 : vector<16x1xf32>
    %160 = vector.broadcast %152 : vector<16x1xf32> to vector<16x32xf32>
    %161 = arith.subf %146, %160 : vector<16x32xf32>
    %cst_52 = arith.constant 9.99999974E-6 : f32
    %162 = vector.broadcast %cst_52 : f32 to vector<16x1xf32>
    %163 = arith.addf %159, %162 : vector<16x1xf32>
    %164 = math.rsqrt %163 : vector<16x1xf32>
    %165 = vector.broadcast %164 : vector<16x1xf32> to vector<16x32xf32>
    %166 = arith.mulf %161, %165 : vector<16x32xf32>
    %167 = vector.broadcast %147 : vector<1x32xf32> to vector<16x32xf32>
    %168 = arith.mulf %166, %167 : vector<16x32xf32>
    %169 = vector.broadcast %148 : vector<1x32xf32> to vector<16x32xf32>
    %170 = arith.addf %168, %169 : vector<16x32xf32>
    %171 = arith.truncf %170 : vector<16x32xf32> to vector<16x32xbf16>
    %c1_53 = arith.constant 1 : index
    %c0_54 = arith.constant 0 : index
    %c0_55 = arith.constant 0 : index
    %172 = vector.load %arg3[%c1_53, %c0_54, %c0_55] : memref<2x32x96xbf16, #tpu.memory_space<vmem>>, vector<1x32x96xbf16>
    %173 = vector.shape_cast %172 : vector<1x32x96xbf16> to vector<32x96xbf16>
    %cst_56 = arith.constant dense<0.000000e+00> : vector<16x96xf32>
    %174 = tpu.matmul %171, %173, %cst_56 {dimension_numbers = #tpu.dot_dimension_numbers<[1], [0], [0], [1], [0, 0, 1, 1], [], []>} : vector<16x32xbf16>, vector<32x96xbf16>, vector<16x96xf32> -> vector<16x96xf32>
    %c10 = arith.constant 10 : index
    %c0_57 = arith.constant 0 : index
    %175 = vector.load %arg2[%c10, %c0_57] : memref<20x512xf32, #tpu.memory_space<vmem>>, vector<1x96xf32>
    %176 = vector.broadcast %175 : vector<1x96xf32> to vector<16x96xf32>
    %177 = arith.addf %174, %176 : vector<16x96xf32>
    %178 = vector.extract_strided_slice %177 {offsets = [0, 0], sizes = [16, 32], strides = [1, 1]} : vector<16x96xf32> to vector<16x32xf32>
    %179 = vector.extract_strided_slice %178 {offsets = [0, 0], sizes = [16, 8], strides = [1, 1]} : vector<16x32xf32> to vector<16x8xf32>
    %180 = vector.shape_cast %179 : vector<16x8xf32> to vector<2x8x8xf32>
    %181 = vector.extract_strided_slice %178 {offsets = [0, 8], sizes = [16, 8], strides = [1, 1]} : vector<16x32xf32> to vector<16x8xf32>
    %182 = vector.shape_cast %181 : vector<16x8xf32> to vector<2x8x8xf32>
    %183 = vector.extract_strided_slice %178 {offsets = [0, 16], sizes = [16, 8], strides = [1, 1]} : vector<16x32xf32> to vector<16x8xf32>
    %184 = vector.shape_cast %183 : vector<16x8xf32> to vector<2x8x8xf32>
    %185 = vector.extract_strided_slice %178 {offsets = [0, 24], sizes = [16, 8], strides = [1, 1]} : vector<16x32xf32> to vector<16x8xf32>
    %186 = vector.shape_cast %185 : vector<16x8xf32> to vector<2x8x8xf32>
    %187 = tpu.concatenate %180, %182, %184, %186 in 0 : vector<2x8x8xf32>, vector<2x8x8xf32>, vector<2x8x8xf32>, vector<2x8x8xf32> -> vector<8x8x8xf32>
    %188 = arith.truncf %187 : vector<8x8x8xf32> to vector<8x8x8xbf16>
    %189 = vector.extract_strided_slice %177 {offsets = [0, 32], sizes = [16, 32], strides = [1, 1]} : vector<16x96xf32> to vector<16x32xf32>
    %190 = vector.extract_strided_slice %189 {offsets = [0, 0], sizes = [16, 8], strides = [1, 1]} : vector<16x32xf32> to vector<16x8xf32>
    %191 = vector.shape_cast %190 : vector<16x8xf32> to vector<2x8x8xf32>
    %192 = vector.extract_strided_slice %189 {offsets = [0, 8], sizes = [16, 8], strides = [1, 1]} : vector<16x32xf32> to vector<16x8xf32>
    %193 = vector.shape_cast %192 : vector<16x8xf32> to vector<2x8x8xf32>
    %194 = vector.extract_strided_slice %189 {offsets = [0, 16], sizes = [16, 8], strides = [1, 1]} : vector<16x32xf32> to vector<16x8xf32>
    %195 = vector.shape_cast %194 : vector<16x8xf32> to vector<2x8x8xf32>
    %196 = vector.extract_strided_slice %189 {offsets = [0, 24], sizes = [16, 8], strides = [1, 1]} : vector<16x32xf32> to vector<16x8xf32>
    %197 = vector.shape_cast %196 : vector<16x8xf32> to vector<2x8x8xf32>
    %198 = tpu.concatenate %191, %193, %195, %197 in 0 : vector<2x8x8xf32>, vector<2x8x8xf32>, vector<2x8x8xf32>, vector<2x8x8xf32> -> vector<8x8x8xf32>
    %199 = arith.truncf %198 : vector<8x8x8xf32> to vector<8x8x8xbf16>
    %200 = vector.extract_strided_slice %177 {offsets = [0, 64], sizes = [16, 32], strides = [1, 1]} : vector<16x96xf32> to vector<16x32xf32>
    %201 = vector.extract_strided_slice %200 {offsets = [0, 0], sizes = [16, 8], strides = [1, 1]} : vector<16x32xf32> to vector<16x8xf32>
    %202 = vector.shape_cast %201 : vector<16x8xf32> to vector<2x8x8xf32>
    %203 = vector.extract_strided_slice %200 {offsets = [0, 8], sizes = [16, 8], strides = [1, 1]} : vector<16x32xf32> to vector<16x8xf32>
    %204 = vector.shape_cast %203 : vector<16x8xf32> to vector<2x8x8xf32>
    %205 = vector.extract_strided_slice %200 {offsets = [0, 16], sizes = [16, 8], strides = [1, 1]} : vector<16x32xf32> to vector<16x8xf32>
    %206 = vector.shape_cast %205 : vector<16x8xf32> to vector<2x8x8xf32>
    %207 = vector.extract_strided_slice %200 {offsets = [0, 24], sizes = [16, 8], strides = [1, 1]} : vector<16x32xf32> to vector<16x8xf32>
    %208 = vector.shape_cast %207 : vector<16x8xf32> to vector<2x8x8xf32>
    %209 = tpu.concatenate %202, %204, %206, %208 in 0 : vector<2x8x8xf32>, vector<2x8x8xf32>, vector<2x8x8xf32>, vector<2x8x8xf32> -> vector<8x8x8xf32>
    %210 = arith.truncf %209 : vector<8x8x8xf32> to vector<8x8x8xbf16>
    "tpu.trace_start"() <{level = 10 : i32, message = "gqd,gkd->gqk"}> : () -> ()
    %cst_58 = arith.constant dense<0.000000e+00> : vector<8x8x8xf32>
    %211 = tpu.matmul %188, %199, %cst_58 {dimension_numbers = #tpu.dot_dimension_numbers<[2], [2], [1], [1], [0, 0, 0, 1, 1, 1], [0], [0]>} : vector<8x8x8xbf16>, vector<8x8x8xbf16>, vector<8x8x8xf32> -> vector<8x8x8xf32>
    "tpu.trace_stop"() : () -> ()
    %212 = arith.addf %211, %29 : vector<8x8x8xf32>
    %cst_59 = arith.constant dense<0xFF800000> : vector<8x8xf32>
    %213 = vector.multi_reduction <maximumf>, %212, %cst_59 [2] : vector<8x8x8xf32> to vector<8x8xf32>
    %214 = vector.shape_cast %213 : vector<8x8xf32> to vector<8x8x1xf32>
    %215 = vector.broadcast %214 : vector<8x8x1xf32> to vector<8x8x8xf32>
    %216 = arith.subf %212, %215 : vector<8x8x8xf32>
    %217 = math.exp %216 : vector<8x8x8xf32>
    %cst_60 = arith.constant dense<0.000000e+00> : vector<8x8xf32>
    %218 = vector.multi_reduction <add>, %217, %cst_60 [2] : vector<8x8x8xf32> to vector<8x8xf32>
    %219 = vector.shape_cast %218 : vector<8x8xf32> to vector<8x8x1xf32>
    %220 = tpu.reciprocal %219 {approx = true} : vector<8x8x1xf32> -> vector<8x8x1xf32>
    %221 = vector.broadcast %220 : vector<8x8x1xf32> to vector<8x8x8xf32>
    %222 = arith.mulf %217, %221 : vector<8x8x8xf32>
    %223 = arith.truncf %222 : vector<8x8x8xf32> to vector<8x8x8xbf16>
    "tpu.trace_start"() <{level = 10 : i32, message = "gqk,gkd->gqd"}> : () -> ()
    %cst_61 = arith.constant dense<0.000000e+00> : vector<8x8x8xf32>
    %224 = tpu.matmul %223, %210, %cst_61 {dimension_numbers = #tpu.dot_dimension_numbers<[2], [1], [1], [2], [0, 0, 0, 1, 1, 2], [0], [0]>} : vector<8x8x8xbf16>, vector<8x8x8xbf16>, vector<8x8x8xf32> -> vector<8x8x8xf32>
    "tpu.trace_stop"() : () -> ()
    %225 = vector.shape_cast %224 : vector<8x8x8xf32> to vector<4x16x8xf32>
    %226 = arith.truncf %225 : vector<4x16x8xf32> to vector<4x16x8xbf16>
    %c1_62 = arith.constant 1 : index
    %c0_63 = arith.constant 0 : index
    %c0_64 = arith.constant 0 : index
    %227 = vector.load %arg4[%c1_62, %c0_63, %c0_64] : memref<2x32x32xbf16, #tpu.memory_space<vmem>>, vector<1x32x32xbf16>
    %228 = vector.shape_cast %227 : vector<1x32x32xbf16> to vector<32x32xbf16>
    %229 = vector.shape_cast %228 : vector<32x32xbf16> to vector<4x8x32xbf16>
    "tpu.trace_start"() <{level = 10 : i32, message = "hnd,hdo->hno"}> : () -> ()
    %cst_65 = arith.constant dense<0.000000e+00> : vector<4x16x32xf32>
    %230 = tpu.matmul %226, %229, %cst_65 {dimension_numbers = #tpu.dot_dimension_numbers<[2], [1], [1], [2], [0, 0, 0, 1, 1, 2], [0], [0]>} : vector<4x16x8xbf16>, vector<4x8x32xbf16>, vector<4x16x32xf32> -> vector<4x16x32xf32>
    "tpu.trace_stop"() : () -> ()
    %cst_66 = arith.constant dense<0.000000e+00> : vector<16x32xf32>
    %231 = vector.multi_reduction <add>, %230, %cst_66 [0] : vector<4x16x32xf32> to vector<16x32xf32>
    %c11 = arith.constant 11 : index
    %c0_67 = arith.constant 0 : index
    %232 = vector.load %arg2[%c11, %c0_67] : memref<20x512xf32, #tpu.memory_space<vmem>>, vector<1x32xf32>
    %233 = vector.broadcast %232 : vector<1x32xf32> to vector<16x32xf32>
    %234 = arith.addf %231, %233 : vector<16x32xf32>
    %235 = arith.addf %170, %234 : vector<16x32xf32>
    %c14 = arith.constant 14 : index
    %c0_68 = arith.constant 0 : index
    %236 = vector.load %arg2[%c14, %c0_68] : memref<20x512xf32, #tpu.memory_space<vmem>>, vector<1x32xf32>
    %c15 = arith.constant 15 : index
    %c0_69 = arith.constant 0 : index
    %237 = vector.load %arg2[%c15, %c0_69] : memref<20x512xf32, #tpu.memory_space<vmem>>, vector<1x32xf32>
    %cst_70 = arith.constant dense<0.000000e+00> : vector<16xf32>
    %238 = vector.multi_reduction <add>, %235, %cst_70 [1] : vector<16x32xf32> to vector<16xf32>
    %239 = vector.shape_cast %238 : vector<16xf32> to vector<16x1xf32>
    %cst_71 = arith.constant 3.200000e+01 : f32
    %240 = vector.broadcast %cst_71 : f32 to vector<16x1xf32>
    %241 = arith.divf %239, %240 : vector<16x1xf32>
    %242 = vector.broadcast %241 : vector<16x1xf32> to vector<16x32xf32>
    %243 = arith.subf %235, %242 : vector<16x32xf32>
    %244 = arith.mulf %243, %243 : vector<16x32xf32>
    %cst_72 = arith.constant dense<0.000000e+00> : vector<16xf32>
    %245 = vector.multi_reduction <add>, %244, %cst_72 [1] : vector<16x32xf32> to vector<16xf32>
    %246 = vector.shape_cast %245 : vector<16xf32> to vector<16x1xf32>
    %cst_73 = arith.constant 3.200000e+01 : f32
    %247 = vector.broadcast %cst_73 : f32 to vector<16x1xf32>
    %248 = arith.divf %246, %247 : vector<16x1xf32>
    %249 = vector.broadcast %241 : vector<16x1xf32> to vector<16x32xf32>
    %250 = arith.subf %235, %249 : vector<16x32xf32>
    %cst_74 = arith.constant 9.99999974E-6 : f32
    %251 = vector.broadcast %cst_74 : f32 to vector<16x1xf32>
    %252 = arith.addf %248, %251 : vector<16x1xf32>
    %253 = math.rsqrt %252 : vector<16x1xf32>
    %254 = vector.broadcast %253 : vector<16x1xf32> to vector<16x32xf32>
    %255 = arith.mulf %250, %254 : vector<16x32xf32>
    %256 = vector.broadcast %236 : vector<1x32xf32> to vector<16x32xf32>
    %257 = arith.mulf %255, %256 : vector<16x32xf32>
    %258 = vector.broadcast %237 : vector<1x32xf32> to vector<16x32xf32>
    %259 = arith.addf %257, %258 : vector<16x32xf32>
    %260 = arith.truncf %259 : vector<16x32xf32> to vector<16x32xbf16>
    %c1_75 = arith.constant 1 : index
    %c0_76 = arith.constant 0 : index
    %c0_77 = arith.constant 0 : index
    %261 = vector.load %arg5[%c1_75, %c0_76, %c0_77] : memref<2x32x64xbf16, #tpu.memory_space<vmem>>, vector<1x32x64xbf16>
    %262 = vector.shape_cast %261 : vector<1x32x64xbf16> to vector<32x64xbf16>
    %cst_78 = arith.constant dense<0.000000e+00> : vector<16x64xf32>
    %263 = tpu.matmul %260, %262, %cst_78 {dimension_numbers = #tpu.dot_dimension_numbers<[1], [0], [0], [1], [0, 0, 1, 1], [], []>} : vector<16x32xbf16>, vector<32x64xbf16>, vector<16x64xf32> -> vector<16x64xf32>
    %c12 = arith.constant 12 : index
    %c0_79 = arith.constant 0 : index
    %264 = vector.load %arg2[%c12, %c0_79] : memref<20x512xf32, #tpu.memory_space<vmem>>, vector<1x64xf32>
    %265 = vector.broadcast %264 : vector<1x64xf32> to vector<16x64xf32>
    %266 = arith.addf %263, %265 : vector<16x64xf32>
    %267 = arith.mulf %266, %266 : vector<16x64xf32>
    %268 = arith.mulf %266, %267 : vector<16x64xf32>
    %cst_80 = arith.constant 4.471500e-02 : f32
    %269 = vector.broadcast %cst_80 : f32 to vector<16x64xf32>
    %270 = arith.mulf %269, %268 : vector<16x64xf32>
    %271 = arith.addf %266, %270 : vector<16x64xf32>
    %cst_81 = arith.constant 0.797884583 : f32
    %272 = vector.broadcast %cst_81 : f32 to vector<16x64xf32>
    %273 = arith.mulf %272, %271 : vector<16x64xf32>
    %274 = math.tanh %273 : vector<16x64xf32>
    %cst_82 = arith.constant 1.000000e+00 : f32
    %275 = vector.broadcast %cst_82 : f32 to vector<16x64xf32>
    %276 = arith.addf %275, %274 : vector<16x64xf32>
    %cst_83 = arith.constant 5.000000e-01 : f32
    %277 = vector.broadcast %cst_83 : f32 to vector<16x64xf32>
    %278 = arith.mulf %277, %276 : vector<16x64xf32>
    %279 = arith.mulf %266, %278 : vector<16x64xf32>
    %280 = arith.truncf %279 : vector<16x64xf32> to vector<16x64xbf16>
    %c1_84 = arith.constant 1 : index
    %c0_85 = arith.constant 0 : index
    %c0_86 = arith.constant 0 : index
    %281 = vector.load %arg6[%c1_84, %c0_85, %c0_86] : memref<2x64x32xbf16, #tpu.memory_space<vmem>>, vector<1x64x32xbf16>
    %282 = vector.shape_cast %281 : vector<1x64x32xbf16> to vector<64x32xbf16>
    %cst_87 = arith.constant dense<0.000000e+00> : vector<16x32xf32>
    %283 = tpu.matmul %280, %282, %cst_87 {dimension_numbers = #tpu.dot_dimension_numbers<[1], [0], [0], [1], [0, 0, 1, 1], [], []>} : vector<16x64xbf16>, vector<64x32xbf16>, vector<16x32xf32> -> vector<16x32xf32>
    %c13 = arith.constant 13 : index
    %c0_88 = arith.constant 0 : index
    %284 = vector.load %arg2[%c13, %c0_88] : memref<20x512xf32, #tpu.memory_space<vmem>>, vector<1x32xf32>
    %285 = vector.broadcast %284 : vector<1x32xf32> to vector<16x32xf32>
    %286 = arith.addf %283, %285 : vector<16x32xf32>
    %287 = arith.addf %259, %286 : vector<16x32xf32>
    %c16 = arith.constant 16 : index
    %c0_89 = arith.constant 0 : index
    %288 = vector.load %arg2[%c16, %c0_89] : memref<20x512xf32, #tpu.memory_space<vmem>>, vector<1x32xf32>
    %c17 = arith.constant 17 : index
    %c0_90 = arith.constant 0 : index
    %289 = vector.load %arg2[%c17, %c0_90] : memref<20x512xf32, #tpu.memory_space<vmem>>, vector<1x32xf32>
    %cst_91 = arith.constant dense<0.000000e+00> : vector<16xf32>
    %290 = vector.multi_reduction <add>, %287, %cst_91 [1] : vector<16x32xf32> to vector<16xf32>
    %291 = vector.shape_cast %290 : vector<16xf32> to vector<16x1xf32>
    %cst_92 = arith.constant 3.200000e+01 : f32
    %292 = vector.broadcast %cst_92 : f32 to vector<16x1xf32>
    %293 = arith.divf %291, %292 : vector<16x1xf32>
    %294 = vector.broadcast %293 : vector<16x1xf32> to vector<16x32xf32>
    %295 = arith.subf %287, %294 : vector<16x32xf32>
    %296 = arith.mulf %295, %295 : vector<16x32xf32>
    %cst_93 = arith.constant dense<0.000000e+00> : vector<16xf32>
    %297 = vector.multi_reduction <add>, %296, %cst_93 [1] : vector<16x32xf32> to vector<16xf32>
    %298 = vector.shape_cast %297 : vector<16xf32> to vector<16x1xf32>
    %cst_94 = arith.constant 3.200000e+01 : f32
    %299 = vector.broadcast %cst_94 : f32 to vector<16x1xf32>
    %300 = arith.divf %298, %299 : vector<16x1xf32>
    %301 = vector.broadcast %293 : vector<16x1xf32> to vector<16x32xf32>
    %302 = arith.subf %287, %301 : vector<16x32xf32>
    %cst_95 = arith.constant 9.99999974E-6 : f32
    %303 = vector.broadcast %cst_95 : f32 to vector<16x1xf32>
    %304 = arith.addf %300, %303 : vector<16x1xf32>
    %305 = math.rsqrt %304 : vector<16x1xf32>
    %306 = vector.broadcast %305 : vector<16x1xf32> to vector<16x32xf32>
    %307 = arith.mulf %302, %306 : vector<16x32xf32>
    %308 = vector.broadcast %288 : vector<1x32xf32> to vector<16x32xf32>
    %309 = arith.mulf %307, %308 : vector<16x32xf32>
    %310 = vector.broadcast %289 : vector<1x32xf32> to vector<16x32xf32>
    %311 = arith.addf %309, %310 : vector<16x32xf32>
    %312 = arith.truncf %311 : vector<16x32xf32> to vector<16x32xbf16>
    %c0_96 = arith.constant 0 : index
    %c0_97 = arith.constant 0 : index
    %313 = vector.load %arg7[%c0_96, %c0_97] : memref<32x512xbf16, #tpu.memory_space<vmem>>, vector<32x512xbf16>
    %cst_98 = arith.constant dense<0.000000e+00> : vector<16x512xf32>
    %314 = tpu.matmul %312, %313, %cst_98 {dimension_numbers = #tpu.dot_dimension_numbers<[1], [0], [0], [1], [0, 0, 1, 1], [], []>} : vector<16x32xbf16>, vector<32x512xbf16>, vector<16x512xf32> -> vector<16x512xf32>
    %c18 = arith.constant 18 : index
    %c0_99 = arith.constant 0 : index
    %315 = vector.load %arg2[%c18, %c0_99] : memref<20x512xf32, #tpu.memory_space<vmem>>, vector<1x512xf32>
    %316 = vector.broadcast %315 : vector<1x512xf32> to vector<16x512xf32>
    %317 = arith.addf %314, %316 : vector<16x512xf32>
    %cst_100 = arith.constant 0.000000e+00 : f32
    %318 = vector.broadcast %cst_100 : f32 to vector<16x512xf32>
    %319 = arith.maximumf %317, %318 : vector<16x512xf32>
    %320 = arith.truncf %319 : vector<16x512xf32> to vector<16x512xbf16>
    %c0_101 = arith.constant 0 : index
    %c0_102 = arith.constant 0 : index
    %321 = vector.load %arg8[%c0_101, %c0_102] : memref<512x256xbf16, #tpu.memory_space<vmem>>, vector<512x256xbf16>
    %cst_103 = arith.constant dense<0.000000e+00> : vector<16x256xf32>
    %322 = tpu.matmul %320, %321, %cst_103 {dimension_numbers = #tpu.dot_dimension_numbers<[1], [0], [0], [1], [0, 0, 1, 1], [], []>} : vector<16x512xbf16>, vector<512x256xbf16>, vector<16x256xf32> -> vector<16x256xf32>
    %c19 = arith.constant 19 : index
    %c0_104 = arith.constant 0 : index
    %323 = vector.load %arg2[%c19, %c0_104] : memref<20x512xf32, #tpu.memory_space<vmem>>, vector<1x256xf32>
    %324 = vector.broadcast %323 : vector<1x256xf32> to vector<16x256xf32>
    %325 = arith.addf %322, %324 : vector<16x256xf32>
    %c0_105 = arith.constant 0 : index
    %c0_106 = arith.constant 0 : index
    %326 = vector.load %arg9[%c0_105, %c0_106] : memref<16x256xf32, #tpu.memory_space<vmem>>, vector<16x256xf32>
    tpu.vector_store %arg9[%c0_105, %c0_106], %325 {strides = array<i32>} : memref<16x256xf32, #tpu.memory_space<vmem>>, vector<16x256xf32>,
    return
  }
}

</mosaic_0001>

<bundles_post_ra>
// kernel: forward.1
= control target key start
LH: loop header
LB: loop body
LE: loop exit
PB: predicated region body
PF: predicated region fallthrough
CT: control target
= control target key end

     0   :  { %vm37_vm0 = vcmask 261120   ;;  %v4396_v15 = vmov 0.0   ;;  %vm4397_vm1 = vmmov 0   ;;  %s4398_s22 = smov 112   ;;  %s4399_s23 = smov 120   ;;  %vm196_vm2 = vcmask 64512   ;;  %s5378_s0 = inlined_call_operand.vmem [shape: f32[16,32], index: 0, kind: input, shape index: {}]   ;;  %s5379_s3 = inlined_call_operand.vmem [shape: bf16[2,32,96], index: 3, kind: input, shape index: {}]   ;;  %s5380_s2 = inlined_call_operand.vmem [shape: f32[20,512], index: 2, kind: input, shape index: {}]   ;;  %s5381_s1 = inlined_call_operand.vmem [shape: f32[2,8], index: 1, kind: input, shape index: {}]   ;;  %s5382_s4 = inlined_call_operand.vmem [shape: bf16[2,32,32], index: 4, kind: input, shape index: {}]   ;;  %s5383_s5 = inlined_call_operand.vmem [shape: bf16[2,32,64], index: 5, kind: input, shape index: {}]   ;;  %s5384_s6 = inlined_call_operand.vmem [shape: bf16[2,64,32], index: 6, kind: input, shape index: {}]   ;;  %s5385_s7 = inlined_call_operand.vmem [shape: bf16[32,512], index: 7, kind: input, shape index: {}]   ;;  %s5386_s8 = inlined_call_operand.vmem [shape: bf16[512,256], index: 8, kind: input, shape index: {}]   ;;  %s5387_s9 = inlined_call_operand.vmem [shape: f32[16,256], index: 9, kind: output, shape index: {}]  }
   0x1   :  { %v33_v0 = vld [vmem:[%s5378_s0] sm:$0xff]  ;;  %v34_v1 = vld [vmem:[%s5378_s0 + $0x8] sm:$0xff]  ;;  %3837 = vmatprep.subr.bf16.mxu0 %v4396_v15  ;;  %3845 = vmatprep.subr.bf16.mxu1 %v4396_v15  ;;  %s4400_s24 = smov 104   ;;  %s4401_s25 = smov 96   ;;  %vm687_vm3 = vcmask 1043456   ;;  %vm1428_vm4 = vcmask 523264  }
   0x2   :  { %v38_v2 = vsel %vm37_vm0, %v33_v0, 0.0  ;;  %v41_v3 = vsel %vm37_vm0, %v34_v1, 0.0  ;;  %v4180_v14 = vld [vmem:[%s5379_s3] sm:$0xff]   ;;  %v4181_v16 = vld [vmem:[%s5379_s3 + $0x8] sm:$0xff]   ;;  %3841 = vmatprep.mubr.msk.bf16.mxu0 %vm4397_vm1, %v4396_v15  ;;  %3847 = vmatprep.mubr.msk.bf16.mxu1 %vm4397_vm1, %v4396_v15  ;;  %s4402_s26 = smov 64  }
   0x3   :  { %39 = vadd.xlane.f32.xlu0 %v38_v2  ;;  %3838 = vmatpush3.bf16.msra.mxu0 %v4180_v14  ;;  %v35_v25 = vld [vmem:[%s5380_s2] ss:$0 sm:$0xff]  ;;  %v36_v29 = vld [vmem:[%s5380_s2 + $0x1] ss:$0 sm:$0xff]  ;;  %v108_v34 = vld [vmem:[%s5380_s2 + $0x2] ss:$0 sm:$0xff] }
   0x4   :  { %3839 = vmatprep.subr.bf16.mxu0 %v4396_v15 }
   0x7   :  { %42 = vadd.xlane.f32.xlu0 %v41_v3  ;;  %3840 = vmatpush3.bf16.msra.mxu0 %v4181_v16  ;;  %v82_v16 = vlaneseq }
   0x8   :  { %3851 = vmatprep.subr.bf16.mxu0 %v4396_v15 }
  0x90   :  { %v40_v4 = vpop.xlane.xlu0 %39 }
  0x91   :  { %v45_v5 = vmul.f32 0.03125, %v40_v4 }
  0x93   :  { %v47_v6 = vsub.f32 %v33_v0, %v45_v5 }
  0x94   :  { %v43_v7 = vpop.xlane.xlu0 %42 }
  0x95   :  { %v46_v8 = vmul.f32 0.03125, %v43_v7  ;;  %v49_v9 = vmul.f32 %v47_v6, %v47_v6 }
  0x97   :  { %v48_v10 = vsub.f32 %v34_v1, %v46_v8  ;;  %v51_v11 = vsel %vm37_vm0, %v49_v9, 0.0 }
  0x98   :  { %52 = vadd.xlane.f32.xlu1 %v51_v11 }
  0x99   :  { %v50_v12 = vmul.f32 %v48_v10, %v48_v10 }
  0x9b   :  { %v54_v13 = vsel %vm37_vm0, %v50_v12, 0.0 }
  0x9c   :  { %55 = vadd.xlane.f32.xlu1 %v54_v13  ;;  %v4403_v13 = vmov 1966171168  }
  0x9d   :  { %v80_v14 = vunpack.c.l.s4 %v4403_v13 }
 0x125   :  { %v53_v17 = vpop.xlane.xlu1 %52 }
 0x126   :  { %v57_v18 = vmul.f32 0.03125, %v53_v17  ;;  %v81_v17 = vunpack.c.0.s8 %v80_v14 }
 0x128   :  { %v59_v19 = vadd.f32 1e-05, %v57_v18  ;;  %v4579_v18 = vshrl.u32 %v82_v16, 7 }
 0x129   :  { %v56_v20 = vpop.xlane.xlu1 %55 }
 0x12a   :  { %4304 = vrsqrt.f32 %v59_v19  ;;  %v58_v21 = vmul.f32 0.03125, %v56_v20  ;;  %v3576_v19 = vld.sshfl [vmem:[%s5381_s1] sm:$0x11 pattern:$0x75316420] }
 0x12b   :  { %v78_v20 = vcombine.high %v3576_v19, %v3576_v19 }
 0x12c   :  { %v60_v22 = vadd.f32 1e-05, %v58_v21  ;;  %v84_v21 = vsub.s32 %v81_v17, %v4579_v18 }
 0x12e   :  { %4306 = vrsqrt.f32 %v60_v22  ;;  %v92_v22 = vrot.slane %v78_v20, %v84_v21 }
 0x134   :  { %v4305_v23 = vpop.eup %4304 }
 0x135   :  { %v63_v24 = vmul.f32 %v4305_v23, %v47_v6  ;;  %v4586_v23 = vsub.s32 0, %v4579_v18 }
 0x137   :  { %v65_v28 = vmul.f32 %v63_v24, %v35_v25  ;;  %v85_v24 = vrot.slane %v3576_v19, %v84_v21 }
 0x138   :  { %v4307_v26 = vpop.eup %4306 }
 0x139   :  { %v64_v27 = vmul.f32 %v4307_v26, %v48_v10  ;;  %v4485_v31 = vadd.f32 %v65_v28, %v36_v29 }
 0x13b   :  { %v66_v30 = vmul.f32 %v64_v27, %v35_v25  ;;  %v4589_v25 = vrot.slane %v92_v22, %v4586_v23  ;;  %v4592_v27 = vrot.slane %v85_v24, %v4586_v23 }
 0x13d   :  { %v4487_v32 = vadd.f32 %v66_v30, %v36_v29 }
 0x13f   :  { %v103_v33 = vpack.c.bf16 %v4487_v32, %v4485_v31 }
 0x141   :  { %3842 = vmatmul.mubr.msk.bf16.vlgmr.msra.gmra.mrb[0].mxu0 %vm37_vm0, %v103_v33 }
 0x142   :  { %3853 = vmatprep.mubr.msk.bf16.mxu0 %vm4397_vm1, %v4396_v15 }
 0x214   :  { %v158_v35 = vpop.f32.mrb[0].mxu0 }
 0x215   :  { %v3843_v36 = vpop.f32.mrb[1].mxu0  ;;  %v159_v38 = vadd.f32 %v158_v35, %v108_v34 }
 0x216   :  { %v161_v37 = vpop.f32.mrb[2].mxu0 }
 0x217   :  { %v162_v39 = vadd.f32 %v161_v37, %v108_v34  ;;  %v3844_v40 = vpop.f32.mrb[3].mxu0  ;;  %v185_v43 = vpack.c.bf16 %v159_v38, %v159_v38 }
 0x219   :  { %v4155_v41 = vpack.i.bf16 %v162_v39, %v159_v38  ;;  %v4499_v42 = vpack.c.bf16 %v162_v39, %v162_v39 }
 0x21b   :  { %4156 = vrot.lane.b32.xlu1 %v4155_v41, %s4398_s22  ;;  %4151 = vrot.lane.b32.xlu0 %v4155_v41, %s4399_s23 }
 0x21f   :  { %4161 = vrot.lane.b32.xlu1 %v4155_v41, %s4400_s24  ;;  %244 = vrot.lane.b32.xlu0 %v4499_v42, %s4401_s25 }
 0x223   :  { %194 = vrot.lane.b32.xlu1 %v185_v43, %s4401_s25 }
 0x28d   :  { %v4157_v44 = vpop.permute.xlu1 %4156  ;;  %v4152_v45 = vpop.permute.xlu0 %4151 }
 0x28e   :  { %v4154_v46 = vunpack.i.h.bf16 %v4152_v45  ;;  %v4153_v47 = vunpack.i.l.bf16 %v4152_v45  ;;  %v4159_v48 = vunpack.i.h.bf16 %v4157_v44  ;;  %v4158_v49 = vunpack.i.l.bf16 %v4157_v44 }
 0x290   :  { %v4505_v50 = vpack.c.bf16 %v4154_v46, %v4154_v46  ;;  %v4507_v51 = vpack.c.bf16 %v4153_v47, %v4153_v47  ;;  %v4514_v55 = vpack.c.bf16 %v4159_v48, %v4159_v48  ;;  %v4516_v56 = vpack.c.bf16 %v4158_v49, %v4158_v49 }
 0x291   :  { %v4162_v52 = vpop.permute.xlu1 %4161  ;;  %v245_v53 = vpop.permute.xlu0 %244 }
 0x292   :  { %v250_v54 = vsel %vm196_vm2, %v245_v53, 0  ;;  %293 = vrot.lane.b32.xlu1 %v4507_v51, %s4401_s25  ;;  %342 = vrot.lane.b32.xlu0 %v4505_v50, %s4401_s25  ;;  %v4164_v57 = vunpack.i.h.bf16 %v4162_v52  ;;  %v4163_v58 = vunpack.i.l.bf16 %v4162_v52 }
 0x293   :  { %3852 = vmatpush3.bf16.xpose.msra.mxu0 %v250_v54 }
 0x294   :  { %3863 = vmatprep.subr.bf16.mxu0 %v4396_v15  ;;  %v4524_v61 = vpack.c.bf16 %v4164_v57, %v4164_v57  ;;  %v4526_v62 = vpack.c.bf16 %v4163_v58, %v4163_v58 }
 0x295   :  { %v195_v59 = vpop.permute.xlu1 %194 }
 0x296   :  { %391 = vrot.lane.b32.xlu1 %v4516_v56, %s4401_s25  ;;  %440 = vrot.lane.b32.xlu0 %v4514_v55, %s4401_s25  ;;  %v201_v60 = vsel %vm196_vm2, %v195_v59, 0 }
 0x297   :  { %3846 = vmatpush3.bf16.xpose.msra.mxu1 %v201_v60 }
 0x298   :  { %3857 = vmatprep.subr.bf16.mxu1 %v4396_v15 }
 0x29a   :  { %489 = vrot.lane.b32.xlu1 %v4526_v62, %s4401_s25  ;;  %538 = vrot.lane.b32.xlu0 %v4524_v61, %s4401_s25 }
 0x29b   :  { %3854 = vmatmul.mubr.msk.bf16.vlgmr.msra.gmra.mrb[4].mxu0 %vm196_vm2, %v4499_v42 }
 0x29c   :  { %3865 = vmatprep.mubr.msk.bf16.mxu0 %vm4397_vm1, %v4396_v15 }
 0x29e   :  { %3848 = vmatmul.mubr.msk.bf16.vlgmr.msra.gmra.mrb[0].mxu1 %vm196_vm2, %v185_v43  ;;  %682 = vrot.lane.b32.xlu1 %v185_v43, %s4402_s26 }
 0x29f   :  { %3859 = vmatprep.mubr.msk.bf16.mxu1 %vm4397_vm1, %v4396_v15 }
 0x304   :  { %v294_v63 = vpop.permute.xlu1 %293  ;;  %v343_v0 = vpop.permute.xlu0 %342 }
 0x305   :  { %v299_v1 = vsel %vm196_vm2, %v294_v63, 0  ;;  %v348_v2 = vsel %vm196_vm2, %v343_v0, 0 }
 0x306   :  { %3858 = vmatpush3.bf16.xpose.msra.mxu1 %v299_v1  ;;  %3864 = vmatpush3.bf16.xpose.msra.mxu0 %v348_v2 }
 0x307   :  { %3869 = vmatprep.subr.bf16.mxu1 %v4396_v15  ;;  %3875 = vmatprep.subr.bf16.mxu0 %v4396_v15 }
 0x308   :  { %v392_v3 = vpop.permute.xlu1 %391  ;;  %v441_v4 = vpop.permute.xlu0 %440 }
 0x309   :  { %v397_v5 = vsel %vm196_vm2, %v392_v3, 0  ;;  %v446_v6 = vsel %vm196_vm2, %v441_v4, 0 }
 0x30c   :  { %v490_v7 = vpop.permute.xlu1 %489  ;;  %v539_v8 = vpop.permute.xlu0 %538 }
 0x30d   :  { %3860 = vmatmul.mubr.msk.bf16.vlgmr.msra.gmra.mrb[4].mxu1 %vm196_vm2, %v4507_v51  ;;  %3866 = vmatmul.mubr.msk.bf16.vlgmr.msra.gmra.mrb[8].mxu0 %vm196_vm2, %v4505_v50  ;;  %v495_v9 = vsel %vm196_vm2, %v490_v7, 0  ;;  %v544_v10 = vsel %vm196_vm2, %v539_v8, 0 }
 0x30e   :  { %3870 = vmatpush3.bf16.xpose.msra.mxu1 %v397_v5  ;;  %3876 = vmatpush3.bf16.xpose.msra.mxu0 %v446_v6 }
 0x30f   :  { %3871 = vmatprep.mubr.msk.bf16.mxu1 %vm4397_vm1, %v4396_v15  ;;  %3877 = vmatprep.mubr.msk.bf16.mxu0 %vm4397_vm1, %v4396_v15 }
 0x310   :  { %3881 = vmatprep.subr.bf16.mxu1 %v4396_v15  ;;  %3887 = vmatprep.subr.bf16.mxu0 %v4396_v15  ;;  %v683_v11 = vpop.permute.xlu1 %682 }
 0x311   :  { %v689_v12 = vsel %vm687_vm3, %v683_v11, 0 }
 0x315   :  { %3872 = vmatmul.mubr.msk.bf16.vlgmr.msra.gmra.mrb[8].mxu1 %vm196_vm2, %v4516_v56  ;;  %3878 = vmatmul.mubr.msk.bf16.vlgmr.msra.gmra.mrb[12].mxu0 %vm196_vm2, %v4514_v55 }
 0x316   :  { %3882 = vmatpush3.bf16.xpose.msra.mxu1 %v495_v9  ;;  %3888 = vmatpush3.bf16.xpose.msra.mxu0 %v544_v10 }
 0x317   :  { %3883 = vmatprep.mubr.msk.bf16.mxu1 %vm4397_vm1, %v4396_v15  ;;  %3889 = vmatprep.mubr.msk.bf16.mxu0 %vm4397_vm1, %v4396_v15 }
 0x318   :  { %3893 = vmatprep.subr.bf16.mxu1 %v4396_v15  ;;  %3899 = vmatprep.subr.bf16.mxu0 %v4396_v15 }
 0x31d   :  { %3884 = vmatmul.mubr.msk.bf16.vlgmr.msra.gmra.mrb[12].mxu1 %vm196_vm2, %v4526_v62  ;;  %3890 = vmatmul.mubr.msk.bf16.vlgmr.msra.gmra.mrb[16].mxu0 %vm196_vm2, %v4524_v61 }
 0x31e   :  { %3894 = vmatpush3.bf16.msra.mxu1 %v689_v12  ;;  %3901 = vmatprep.mubr.msk.bf16.mxu0 %vm4397_vm1, %v4396_v15 }
 0x31f   :  { %3895 = vmatprep.mubr.msk.bf16.mxu1 %vm4397_vm1, %v4396_v15  ;;  %3905 = vmatprep.subr.bf16.mxu1 %v4396_v15 }
 0x36e   :  { %v286_v26 = vpop.f32.mrb[4].mxu0 }
 0x36f   :  { %v287_v28 = vadd.f32 %v286_v26, %v4589_v25  ;;  %v3855_v29 = vpop.f32.mrb[5].mxu0 }
 0x370   :  { %v289_v30 = vpop.f32.mrb[6].mxu0 }
 0x371   :  { %v3856_v33 = vpop.f32.mrb[7].mxu0  ;;  %v237_v34 = vpop.f32.mrb[0].mxu1  ;;  %v589_v35 = vsel %vm196_vm2, %v287_v28, -inf }
 0x372   :  { %v238_v36 = vadd.f32 %v237_v34, %v4592_v27  ;;  %590 = vmax.xlane.f32.xlu0 %v589_v35  ;;  %v3849_v37 = vpop.f32.mrb[1].mxu1 }
 0x373   :  { %v240_v38 = vpop.f32.mrb[2].mxu1 }
 0x374   :  { %v3850_v39 = vpop.f32.mrb[3].mxu1  ;;  %v586_v40 = vsel %vm196_vm2, %v238_v36, -inf }
 0x375   :  { %587 = vmax.xlane.f32.xlu1 %v586_v40 }
 0x3e0   :  { %v335_v41 = vpop.f32.mrb[4].mxu1  ;;  %v384_v43 = vpop.f32.mrb[8].mxu0 }
 0x3e1   :  { %v336_v44 = vadd.f32 %v335_v41, %v4592_v27  ;;  %v3861_v45 = vpop.f32.mrb[5].mxu1  ;;  %v3867_v46 = vpop.f32.mrb[9].mxu0  ;;  %v385_v49 = vadd.f32 %v384_v43, %v4589_v25 }
 0x3e2   :  { %v338_v47 = vpop.f32.mrb[6].mxu1  ;;  %v387_v48 = vpop.f32.mrb[10].mxu0 }
 0x3e3   :  { %v3862_v52 = vpop.f32.mrb[7].mxu1  ;;  %v3868_v53 = vpop.f32.mrb[11].mxu0  ;;  %v592_v54 = vsel %vm196_vm2, %v336_v44, -inf  ;;  %v595_v57 = vsel %vm196_vm2, %v385_v49, -inf }
 0x3e4   :  { %593 = vmax.xlane.f32.xlu0 %v592_v54 }
 0x3e8   :  { %v433_v58 = vpop.f32.mrb[8].mxu1  ;;  %596 = vmax.xlane.f32.xlu0 %v595_v57  ;;  %v482_v59 = vpop.f32.mrb[12].mxu0 }
 0x3e9   :  { %v434_v60 = vadd.f32 %v433_v58, %v4592_v27  ;;  %v4604_v63 = vadd.f32 %v482_v59, %v4589_v25  ;;  %v3873_v0 = vpop.f32.mrb[9].mxu1  ;;  %v3879_v1 = vpop.f32.mrb[13].mxu0 }
 0x3ea   :  { %v436_v2 = vpop.f32.mrb[10].mxu1  ;;  %v485_v3 = vpop.f32.mrb[14].mxu0 }
 0x3eb   :  { %v3874_v4 = vpop.f32.mrb[11].mxu1  ;;  %v3880_v5 = vpop.f32.mrb[15].mxu0  ;;  %v598_v6 = vsel %vm196_vm2, %v434_v60, -inf  ;;  %v601_v7 = vsel %vm196_vm2, %v4604_v63, -inf }
 0x3ec   :  { %599 = vmax.xlane.f32.xlu1 %v598_v6  ;;  %602 = vmax.xlane.f32.xlu0 %v601_v7 }
 0x3f0   :  { %v531_v8 = vpop.f32.mrb[12].mxu1  ;;  %v580_v9 = vpop.f32.mrb[16].mxu0 }
 0x3f1   :  { %v532_v10 = vadd.f32 %v531_v8, %v4592_v27  ;;  %v4611_v11 = vadd.f32 %v580_v9, %v4589_v25  ;;  %v3885_v12 = vpop.f32.mrb[13].mxu1  ;;  %v3891_v13 = vpop.f32.mrb[17].mxu0 }
 0x3f2   :  { %v534_v14 = vpop.f32.mrb[14].mxu1  ;;  %v583_v16 = vpop.f32.mrb[18].mxu0 }
 0x3f3   :  { %v3886_v17 = vpop.f32.mrb[15].mxu1  ;;  %v3892_v19 = vpop.f32.mrb[19].mxu0  ;;  %v604_v20 = vsel %vm196_vm2, %v532_v10, -inf  ;;  %v607_v21 = vsel %vm196_vm2, %v4611_v11, -inf }
 0x3f4   :  { %605 = vmax.xlane.f32.xlu1 %v604_v20  ;;  %608 = vmax.xlane.f32.xlu0 %v607_v21 }
 0x3ff   :  { %v591_v22 = vpop.xlane.xlu0 %590 }
 0x400   :  { %v611_v24 = vsub.f32 %v287_v28, %v591_v22 }
 0x402   :  { %v588_v26 = vpop.xlane.xlu1 %587  ;;  %v620_v29 = vmul.f32 1.442695, %v611_v24 }
 0x403   :  { %v610_v30 = vsub.f32 %v238_v36, %v588_v26 }
 0x404   :  { %4308 = vpow2.f32 %v620_v29 }
 0x405   :  { %779 = vrot.lane.b32.xlu1 %v4507_v51, %s4402_s26  ;;  %v618_v33 = vmul.f32 1.442695, %v610_v30 }
 0x407   :  { %4310 = vpow2.f32 %v618_v33 }
 0x409   :  { %827 = vrot.lane.b32.xlu1 %v4505_v50, %s4402_s26 }
 0x40a   :  { %731 = vrot.lane.b32.xlu0 %v4499_v42, %s4402_s26 }
 0x40e   :  { %v4309_v34 = vpop.eup %4308 }
 0x40f   :  { %v637_v35 = vsel %vm196_vm2, %v4309_v34, 0.0 }
 0x411   :  { %v4623_v37 = vpop.eup %4310 }
 0x412   :  { %v634_v50 = vsel %vm196_vm2, %v4623_v37, 0.0 }
 0x429   :  { %638 = vadd.xlane.f32.xlu0 %v637_v35 }
 0x42d   :  { %635 = vadd.xlane.f32.xlu1 %v634_v50 }
 0x43e   :  { %875 = vrot.lane.b32.xlu1 %v4516_v56, %s4402_s26 }
 0x471   :  { %v594_v42 = vpop.xlane.xlu0 %593 }
 0x472   :  { %v612_v51 = vsub.f32 %v336_v44, %v594_v42 }
 0x474   :  { %v622_v28 = vmul.f32 1.442695, %v612_v51 }
 0x475   :  { %v597_v36 = vpop.xlane.xlu0 %596 }
 0x476   :  { %4312 = vpow2.f32 %v622_v28  ;;  %v613_v38 = vsub.f32 %v385_v49, %v597_v36 }
 0x478   :  { %v624_v39 = vmul.f32 1.442695, %v613_v38 }
 0x479   :  { %v600_v40 = vpop.xlane.xlu1 %599  ;;  %v603_v45 = vpop.xlane.xlu0 %602 }
 0x47a   :  { %4314 = vpow2.f32 %v624_v39  ;;  %v614_v41 = vsub.f32 %v434_v60, %v600_v40  ;;  %v615_v1 = vsub.f32 %v4604_v63, %v603_v45 }
 0x47c   :  { %v626_v43 = vmul.f32 1.442695, %v614_v41  ;;  %v628_v2 = vmul.f32 1.442695, %v615_v1  ;;  %v1071_v41 = vld [vmem:[%s5382_s4] sm:$0xf] }
 0x47e   :  { %4316 = vpow2.f32 %v626_v43 }
 0x480   :  { %v4629_v46 = vpop.eup %4312 }
 0x481   :  { %v606_v47 = vpop.xlane.xlu1 %605  ;;  %v609_v48 = vpop.xlane.xlu0 %608  ;;  %v640_v56 = vsel %vm196_vm2, %v4629_v46, 0.0 }
 0x482   :  { %v616_v52 = vsub.f32 %v532_v10, %v606_v47  ;;  %641 = vadd.xlane.f32.xlu1 %v640_v56  ;;  %v617_v3 = vsub.f32 %v4611_v11, %v609_v48 }
 0x484   :  { %v4633_v44 = vpop.eup %4314  ;;  %v630_v53 = vmul.f32 1.442695, %v616_v52  ;;  %v632_v4 = vmul.f32 1.442695, %v617_v3 }
 0x485   :  { %v732_v49 = vpop.permute.xlu0 %731  ;;  %v643_v54 = vsel %vm196_vm2, %v4633_v44, 0.0  ;;  %v780_v5 = vpop.permute.xlu1 %779 }
 0x486   :  { %4318 = vpow2.f32 %v630_v53  ;;  %v737_v57 = vsel %vm687_vm3, %v732_v49, 0  ;;  %644 = vadd.xlane.f32.xlu0 %v643_v54  ;;  %v785_v19 = vsel %vm687_vm3, %v780_v5, 0 }
 0x487   :  { %3900 = vmatpush3.bf16.msra.mxu0 %v737_v57  ;;  %4320 = vpow2.f32 %v628_v2 }
 0x488   :  { %v4638_v58 = vpop.eup %4316  ;;  %3911 = vmatprep.subr.bf16.mxu0 %v4396_v15  ;;  %4322 = vpow2.f32 %v632_v4 }
 0x489   :  { %v646_v59 = vsel %vm196_vm2, %v4638_v58, 0.0  ;;  %v828_v6 = vpop.permute.xlu1 %827 }
 0x48a   :  { %647 = vadd.xlane.f32.xlu1 %v646_v59  ;;  %v833_v14 = vsel %vm687_vm3, %v828_v6, 0  ;;  %v1072_v59 = vld [vmem:[%s5382_s4 + $0x4] sm:$0xf] }
 0x490   :  { %v4643_v60 = vpop.eup %4318 }
 0x491   :  { %v652_v0 = vsel %vm196_vm2, %v4643_v60, 0.0  ;;  %v4653_v8 = vpop.eup %4320 }
 0x492   :  { %653 = vadd.xlane.f32.xlu1 %v652_v0  ;;  %v4657_v10 = vpop.eup %4322 }
 0x49c   :  { %923 = vrot.lane.b32.xlu0 %v4514_v55, %s4402_s26  ;;  %v649_v55 = vsel %vm196_vm2, %v4653_v8, 0.0 }
 0x4a3   :  { %971 = vrot.lane.b32.xlu1 %v4526_v62, %s4402_s26  ;;  %v655_v62 = vsel %vm196_vm2, %v4657_v10, 0.0 }
 0x4b6   :  { %v639_v7 = vpop.xlane.xlu0 %638 }
 0x4b7   :  { %4324 = vrcp.f32 %v639_v7 }
 0x4ba   :  { %v636_v9 = vpop.xlane.xlu1 %635 }
 0x4bb   :  { %4326 = vrcp.f32 %v636_v9  ;;  %650 = vadd.xlane.f32.xlu0 %v649_v55  ;;  %v1073_v9 = vld [vmem:[%s5382_s4 + $0x8] sm:$0xf] }
 0x4bc   :  { %v1173_v55 = vsel %vm687_vm3, %v1073_v9, 0 }
 0x4be   :  { %v876_v20 = vpop.permute.xlu1 %875 }
 0x4bf   :  { %656 = vadd.xlane.f32.xlu0 %v655_v62 }
 0x4c1   :  { %v4325_v63 = vpop.eup %4324 }
 0x4c2   :  { %v667_v11 = vmul.f32 %v4325_v63, %v4309_v34  ;;  %v881_v34 = vsel %vm687_vm3, %v876_v20, 0 }
 0x4c4   :  { %v675_v12 = vpack.c.bf16 %v667_v11, %v667_v11  ;;  %v1074_v11 = vld [vmem:[%s5382_s4 + $0xc] sm:$0xf] }
 0x4c5   :  { %v4327_v13 = vpop.eup %4326 }
 0x4c6   :  { %v666_v16 = vmul.f32 %v4327_v13, %v4623_v37  ;;  %3902 = vmatmul.mubr.msk.bf16.vlgmr.msra.gmra.mrb[20].mxu0 %vm196_vm2, %v675_v12 }
 0x4c7   :  { %3912 = vmatpush3.bf16.msra.mxu0 %v833_v14  ;;  %3913 = vmatprep.mubr.msk.bf16.mxu0 %vm4397_vm1, %v4396_v15 }
 0x4c8   :  { %v674_v17 = vpack.c.bf16 %v666_v16, %v666_v16  ;;  %3923 = vmatprep.subr.bf16.mxu0 %v4396_v15 }
 0x4ca   :  { %3896 = vmatmul.mubr.msk.bf16.vlgmr.msra.gmra.mrb[16].mxu1 %vm196_vm2, %v674_v17  ;;  %v1220_v17 = vsel %vm687_vm3, %v1074_v11, 0 }
 0x4cb   :  { %3906 = vmatpush3.bf16.msra.mxu1 %v785_v19  ;;  %3907 = vmatprep.mubr.msk.bf16.mxu1 %vm4397_vm1, %v4396_v15 }
 0x4cc   :  { %3917 = vmatprep.subr.bf16.mxu1 %v4396_v15 }
 0x4d5   :  { %1019 = vrot.lane.b32.xlu0 %v4524_v61, %s4402_s26 }
 0x50f   :  { %v642_v21 = vpop.xlane.xlu1 %641 }
 0x510   :  { %4328 = vrcp.f32 %v642_v21 }
 0x513   :  { %v645_v22 = vpop.xlane.xlu0 %644 }
 0x514   :  { %4330 = vrcp.f32 %v645_v22 }
 0x517   :  { %v648_v24 = vpop.xlane.xlu1 %647  ;;  %v924_v61 = vpop.permute.xlu0 %923 }
 0x518   :  { %4332 = vrcp.f32 %v648_v24  ;;  %v929_v28 = vsel %vm687_vm3, %v924_v61, 0 }
 0x51a   :  { %v4329_v26 = vpop.eup %4328 }
 0x51b   :  { %v668_v29 = vmul.f32 %v4329_v26, %v4629_v46  ;;  %v1079_v46 = vsel %vm687_vm3, %v1071_v41, 0 }
 0x51d   :  { %v676_v30 = vpack.c.bf16 %v668_v29, %v668_v29 }
 0x51e   :  { %v4331_v33 = vpop.eup %4330 }
 0x51f   :  { %v669_v35 = vmul.f32 %v4331_v33, %v4633_v44  ;;  %3908 = vmatmul.mubr.msk.bf16.vlgmr.msra.gmra.mrb[20].mxu1 %vm196_vm2, %v676_v30  ;;  %v654_v37 = vpop.xlane.xlu1 %653 }
 0x520   :  { %3918 = vmatpush3.bf16.msra.mxu1 %v881_v34  ;;  %4334 = vrcp.f32 %v654_v37  ;;  %3919 = vmatprep.mubr.msk.bf16.mxu1 %vm4397_vm1, %v4396_v15 }
 0x521   :  { %v677_v50 = vpack.c.bf16 %v669_v35, %v669_v35  ;;  %3929 = vmatprep.subr.bf16.mxu1 %v4396_v15 }
 0x522   :  { %v4333_v42 = vpop.eup %4332 }
 0x523   :  { %v670_v51 = vmul.f32 %v4333_v42, %v4638_v58  ;;  %3914 = vmatmul.mubr.msk.bf16.vlgmr.msra.gmra.mrb[24].mxu0 %vm196_vm2, %v677_v50  ;;  %v972_v36 = vpop.permute.xlu1 %971 }
 0x524   :  { %3924 = vmatpush3.bf16.msra.mxu0 %v929_v28  ;;  %3925 = vmatprep.mubr.msk.bf16.mxu0 %vm4397_vm1, %v4396_v15  ;;  %v977_v39 = vsel %vm687_vm3, %v972_v36, 0 }
 0x525   :  { %v678_v38 = vpack.c.bf16 %v670_v51, %v670_v51  ;;  %3935 = vmatprep.subr.bf16.mxu0 %v4396_v15 }
 0x527   :  { %3920 = vmatmul.mubr.msk.bf16.vlgmr.msra.gmra.mrb[24].mxu1 %vm196_vm2, %v678_v38 }
 0x528   :  { %3930 = vmatpush3.bf16.msra.mxu1 %v977_v39  ;;  %3931 = vmatprep.mubr.msk.bf16.mxu1 %vm4397_vm1, %v4396_v15 }
 0x529   :  { %3941 = vmatprep.subr.bf16.mxu1 %v4396_v15 }
 0x52a   :  { %v4335_v40 = vpop.eup %4334 }
 0x52b   :  { %v672_v43 = vmul.f32 %v4335_v40, %v4643_v60  ;;  %v1126_v60 = vsel %vm687_vm3, %v1072_v59, 0 }
 0x52d   :  { %v680_v45 = vpack.c.bf16 %v672_v43, %v672_v43 }
 0x52f   :  { %3932 = vmatmul.mubr.msk.bf16.vlgmr.msra.gmra.mrb[28].mxu1 %vm196_vm2, %v680_v45 }
 0x530   :  { %3942 = vmatpush3.bf16.msra.mxu1 %v1079_v46  ;;  %3943 = vmatprep.mubr.msk.bf16.mxu1 %vm4397_vm1, %v4396_v15 }
 0x531   :  { %3953 = vmatprep.subr.bf16.mxu1 %v4396_v15 }
 0x548   :  { %v651_v47 = vpop.xlane.xlu0 %650 }
 0x549   :  { %4336 = vrcp.f32 %v651_v47 }
 0x54c   :  { %v657_v48 = vpop.xlane.xlu0 %656 }
 0x54d   :  { %4338 = vrcp.f32 %v657_v48 }
 0x550   :  { %v1020_v44 = vpop.permute.xlu0 %1019 }
 0x551   :  { %v1025_v54 = vsel %vm687_vm3, %v1020_v44, 0 }
 0x553   :  { %v4337_v56 = vpop.eup %4336 }
 0x554   :  { %v671_v52 = vmul.f32 %v4337_v56, %v4653_v8 }
 0x556   :  { %v679_v53 = vpack.c.bf16 %v671_v52, %v671_v52 }
 0x557   :  { %v4339_v49 = vpop.eup %4338 }
 0x558   :  { %3926 = vmatmul.mubr.msk.bf16.vlgmr.msra.gmra.mrb[28].mxu0 %vm196_vm2, %v679_v53  ;;  %v673_v57 = vmul.f32 %v4339_v49, %v4657_v10 }
 0x559   :  { %3936 = vmatpush3.bf16.msra.mxu0 %v1025_v54  ;;  %3937 = vmatprep.mubr.msk.bf16.mxu0 %vm4397_vm1, %v4396_v15 }
 0x55a   :  { %3947 = vmatprep.subr.bf16.mxu0 %v4396_v15  ;;  %v681_v58 = vpack.c.bf16 %v673_v57, %v673_v57 }
 0x560   :  { %3938 = vmatmul.mubr.msk.bf16.vlgmr.msra.gmra.mrb[32].mxu0 %vm196_vm2, %v681_v58 }
 0x561   :  { %3949 = vmatprep.mubr.msk.bf16.mxu0 %vm4397_vm1, %v4396_v15  ;;  %3948 = vmatpush3.bf16.msra.mxu0 %v1126_v60 }
 0x562   :  { %3959 = vmatprep.subr.bf16.mxu0 %v4396_v15 }
 0x599   :  { %v773_v0 = vpop.f32.mrb[20].mxu0 }
 0x59a   :  { %v3903_v1 = vpop.f32.mrb[21].mxu0 }
 0x59b   :  { %v776_v2 = vpop.f32.mrb[22].mxu0 }
 0x59c   :  { %v3904_v3 = vpop.f32.mrb[23].mxu0 }
 0x59d   :  { %v725_v4 = vpop.f32.mrb[16].mxu1 }
 0x59e   :  { %v1067_v5 = vpack.c.bf16 %v773_v0, %v725_v4  ;;  %v3897_v6 = vpop.f32.mrb[17].mxu1 }
 0x59f   :  { %v728_v7 = vpop.f32.mrb[18].mxu1 }
 0x5a0   :  { %v3898_v8 = vpop.f32.mrb[19].mxu1  ;;  %3944 = vmatmul.mubr.msk.bf16.vlgmr.msra.gmra.mrb[32].mxu1 %vm196_vm2, %v1067_v5  ;;  %v1277_v7 = vld [vmem:[%s5380_s2 + $0x3] ss:$0 sm:$0xff] }
 0x5a1   :  { %3955 = vmatprep.mubr.msk.bf16.mxu1 %vm4397_vm1, %v4396_v15  ;;  %3954 = vmatpush3.bf16.msra.mxu1 %v1173_v55 }
 0x5a2   :  { %3965 = vmatprep.subr.bf16.mxu1 %v4396_v15 }
 0x5f2   :  { %v821_v10 = vpop.f32.mrb[20].mxu1 }
 0x5f3   :  { %v3909_v62 = vpop.f32.mrb[21].mxu1 }
 0x5f4   :  { %v824_v63 = vpop.f32.mrb[22].mxu1 }
 0x5f5   :  { %v3910_v12 = vpop.f32.mrb[23].mxu1 }
 0x5f6   :  { %v869_v13 = vpop.f32.mrb[24].mxu0 }
 0x5f7   :  { %v1068_v14 = vpack.c.bf16 %v869_v13, %v821_v10  ;;  %v3915_v16 = vpop.f32.mrb[25].mxu0 }
 0x5f8   :  { %v872_v19 = vpop.f32.mrb[26].mxu0 }
 0x5f9   :  { %v3916_v20 = vpop.f32.mrb[27].mxu0  ;;  %3950 = vmatmul.mubr.msk.bf16.vlgmr.msra.gmra.mrb[36].mxu0 %vm196_vm2, %v1068_v14 }
 0x5fa   :  { %v917_v21 = vpop.f32.mrb[24].mxu1  ;;  %3960 = vmatpush3.bf16.msra.mxu0 %v1220_v17  ;;  %3961 = vmatprep.mubr.msk.bf16.mxu0 %vm4397_vm1, %v4396_v15 }
 0x5fb   :  { %v3921_v22 = vpop.f32.mrb[25].mxu1  ;;  %3973 = vmatprep.subr.bf16.mxu0 %v4396_v15 }
 0x5fc   :  { %v920_v24 = vpop.f32.mrb[26].mxu1 }
 0x5fd   :  { %v3922_v26 = vpop.f32.mrb[27].mxu1 }
 0x602   :  { %v1013_v29 = vpop.f32.mrb[28].mxu1 }
 0x603   :  { %v3933_v30 = vpop.f32.mrb[29].mxu1 }
 0x604   :  { %v1016_v33 = vpop.f32.mrb[30].mxu1 }
 0x605   :  { %v3934_v34 = vpop.f32.mrb[31].mxu1 }
 0x606   :  { %v4183_v34 = vld [vmem:[%s5383_s5 + $0x8] sm:$0xff]  }
 0x62b   :  { %v965_v35 = vpop.f32.mrb[28].mxu0 }
 0x62c   :  { %v1069_v37 = vpack.c.bf16 %v965_v35, %v917_v21  ;;  %v3927_v61 = vpop.f32.mrb[29].mxu0 }
 0x62d   :  { %v968_v50 = vpop.f32.mrb[30].mxu0 }
 0x62e   :  { %v3928_v42 = vpop.f32.mrb[31].mxu0  ;;  %3956 = vmatmul.mubr.msk.bf16.vlgmr.msra.gmra.mrb[36].mxu1 %vm196_vm2, %v1069_v37 }
 0x62f   :  { %3969 = vmatprep.mubr.msk.bf16.mxu1 %vm4397_vm1, %v4396_v15 }
 0x633   :  { %v1061_v51 = vpop.f32.mrb[32].mxu0 }
 0x634   :  { %v1070_v28 = vpack.c.bf16 %v1061_v51, %v1013_v29  ;;  %v3939_v36 = vpop.f32.mrb[33].mxu0 }
 0x635   :  { %v1064_v38 = vpop.f32.mrb[34].mxu0 }
 0x636   :  { %v3940_v39 = vpop.f32.mrb[35].mxu0  ;;  %3962 = vmatmul.mubr.msk.bf16.vlgmr.msra.gmra.mrb[40].mxu0 %vm196_vm2, %v1070_v28  ;;  %v1282_v38 = vld [vmem:[%s5380_s2 + $0x6] ss:$0 sm:$0xff] }
 0x637   :  { %3981 = vmatprep.mubr.msk.bf16.mxu0 %vm4397_vm1, %v4396_v15 }
 0x673   :  { %v1115_v40 = vpop.f32.mrb[32].mxu1 }
 0x674   :  { %v3945_v41 = vpop.f32.mrb[33].mxu1  ;;  %v1263_v47 = vsel %vm37_vm0, %v1115_v40, 0.0 }
 0x675   :  { %v1118_v43 = vpop.f32.mrb[34].mxu1 }
 0x676   :  { %v3946_v45 = vpop.f32.mrb[35].mxu1  ;;  %v1270_v53 = vsel %vm37_vm0, %v1118_v43, 0.0  ;;  %v1283_v43 = vld [vmem:[%s5380_s2 + $0x7] ss:$0 sm:$0xff] }
 0x6cc   :  { %v1162_v46 = vpop.f32.mrb[36].mxu0 }
 0x6cd   :  { %v1264_v48 = vsel %vm37_vm0, %v1162_v46, 0.0  ;;  %v3951_v56 = vpop.f32.mrb[37].mxu0 }
 0x6ce   :  { %v1265_v52 = vadd.f32 %v1264_v48, %v1263_v47  ;;  %v1165_v44 = vpop.f32.mrb[38].mxu0  ;;  %v4184_v56 = vld [vmem:[%s5384_s6] sm:$0xff]  }
 0x6cf   :  { %v1271_v49 = vsel %vm37_vm0, %v1165_v44, 0.0  ;;  %v3952_v54 = vpop.f32.mrb[39].mxu0  ;;  %3974 = vmatpush3.bf16.msra.mxu0 %v4184_v56  ;;  %v4186_v44 = vld [vmem:[%s5384_s6 + $0x10] sm:$0xff]  }
 0x6d0   :  { %v1272_v57 = vadd.f32 %v1271_v49, %v1270_v53  ;;  %3975 = vmatprep.subr.bf16.mxu0 %v4396_v15  ;;  %v4187_v53 = vld [vmem:[%s5384_s6 + $0x18] sm:$0xff]   ;;  %v1319_v49 = vld [vmem:[%s5380_s2 + $0x4] ss:$0 sm:$0xff] }
 0x701   :  { %v1209_v58 = vpop.f32.mrb[36].mxu1 }
 0x702   :  { %v1266_v59 = vsel %vm37_vm0, %v1209_v58, 0.0  ;;  %v3957_v60 = vpop.f32.mrb[37].mxu1 }
 0x703   :  { %v1267_v0 = vadd.f32 %v1266_v59, %v1265_v52  ;;  %v1212_v1 = vpop.f32.mrb[38].mxu1  ;;  %v4185_v52 = vld [vmem:[%s5384_s6 + $0x8] sm:$0xff]  }
 0x704   :  { %v1273_v2 = vsel %vm37_vm0, %v1212_v1, 0.0  ;;  %v3958_v3 = vpop.f32.mrb[39].mxu1  ;;  %3976 = vmatpush3.bf16.msra.mxu0 %v4185_v52  ;;  %v1475_v52 = vld [vmem:[%s5380_s2 + $0x20] ss:$0 sm:$0xff] }
 0x705   :  { %v1274_v4 = vadd.f32 %v1273_v2, %v1272_v57  ;;  %3977 = vmatprep.subr.bf16.mxu0 %v4396_v15 }
 0x708   :  { %3978 = vmatpush3.bf16.msra.mxu0 %v4186_v44 }
 0x709   :  { %v1256_v5 = vpop.f32.mrb[40].mxu0  ;;  %3979 = vmatprep.subr.bf16.mxu0 %v4396_v15 }
 0x70a   :  { %v1268_v6 = vsel %vm37_vm0, %v1256_v5, 0.0  ;;  %v3963_v8 = vpop.f32.mrb[41].mxu0 }
 0x70b   :  { %v1269_v9 = vadd.f32 %v1268_v6, %v1267_v0  ;;  %v1259_v55 = vpop.f32.mrb[42].mxu0 }
 0x70c   :  { %v1275_v10 = vsel %vm37_vm0, %v1259_v55, 0.0  ;;  %v3964_v62 = vpop.f32.mrb[43].mxu0  ;;  %3980 = vmatpush3.bf16.msra.mxu0 %v4187_v53 }
 0x70d   :  { %v1278_v63 = vadd.f32 %v1277_v7, %v1269_v9  ;;  %v1276_v11 = vadd.f32 %v1275_v10, %v1274_v4  ;;  %3999 = vmatprep.subr.bf16.mxu0 %v4396_v15 }
 0x70f   :  { %v1279_v12 = vadd.f32 %v1277_v7, %v1276_v11  ;;  %v1280_v13 = vadd.f32 %v1278_v63, %v4485_v31 }
 0x711   :  { %v1284_v14 = vsel %vm37_vm0, %v1280_v13, 0.0  ;;  %v1281_v16 = vadd.f32 %v1279_v12, %v4487_v32  ;;  %v4182_v32 = vld [vmem:[%s5383_s5] sm:$0xff]  }
 0x712   :  { %1285 = vadd.xlane.f32.xlu1 %v1284_v14  ;;  %3966 = vmatpush3.bf16.msra.mxu1 %v4182_v32 }
 0x713   :  { %v1287_v17 = vsel %vm37_vm0, %v1281_v16, 0.0  ;;  %3967 = vmatprep.subr.bf16.mxu1 %v4396_v15 }
 0x714   :  { %1288 = vadd.xlane.f32.xlu0 %v1287_v17 }
 0x716   :  { %3968 = vmatpush3.bf16.msra.mxu1 %v4183_v34 }
 0x717   :  { %3985 = vmatprep.subr.bf16.mxu1 %v4396_v15 }
 0x79f   :  { %v1286_v19 = vpop.xlane.xlu1 %1285 }
 0x7a0   :  { %v1290_v20 = vmul.f32 0.03125, %v1286_v19  ;;  %v1403_v19 = vld [vmem:[%s5380_s2 + $0x5] ss:$0 sm:$0xff] }
 0x7a1   :  { %v1289_v21 = vpop.xlane.xlu0 %1288 }
 0x7a2   :  { %v1292_v22 = vsub.f32 %v1280_v13, %v1290_v20  ;;  %v1291_v24 = vmul.f32 0.03125, %v1289_v21 }
 0x7a4   :  { %v1293_v26 = vsub.f32 %v1281_v16, %v1291_v24  ;;  %v1294_v29 = vmul.f32 %v1292_v22, %v1292_v22 }
 0x7a6   :  { %v1296_v30 = vsel %vm37_vm0, %v1294_v29, 0.0  ;;  %v1295_v33 = vmul.f32 %v1293_v26, %v1293_v26 }
 0x7a7   :  { %1297 = vadd.xlane.f32.xlu0 %v1296_v30 }
 0x7a8   :  { %v1299_v31 = vsel %vm37_vm0, %v1295_v33, 0.0 }
 0x7ab   :  { %1300 = vadd.xlane.f32.xlu0 %v1299_v31 }
 0x834   :  { %v1298_v35 = vpop.xlane.xlu0 %1297 }
 0x835   :  { %v1302_v37 = vmul.f32 0.03125, %v1298_v35 }
 0x837   :  { %v1304_v61 = vadd.f32 1e-05, %v1302_v37 }
 0x838   :  { %v1301_v50 = vpop.xlane.xlu0 %1300 }
 0x839   :  { %4340 = vrsqrt.f32 %v1304_v61  ;;  %v1303_v42 = vmul.f32 0.03125, %v1301_v50 }
 0x83b   :  { %v1305_v51 = vadd.f32 1e-05, %v1303_v42 }
 0x83d   :  { %4342 = vrsqrt.f32 %v1305_v51 }
 0x843   :  { %v4341_v28 = vpop.eup %4340 }
 0x844   :  { %v1308_v36 = vmul.f32 %v4341_v28, %v1292_v22 }
 0x846   :  { %v1310_v40 = vmul.f32 %v1308_v36, %v1282_v38 }
 0x847   :  { %v4343_v39 = vpop.eup %4342 }
 0x848   :  { %v1309_v41 = vmul.f32 %v4343_v39, %v1293_v26  ;;  %v1312_v46 = vadd.f32 %v1310_v40, %v1283_v43  ;;  %v4188_v39 = vld [vmem:[%s5379_s3 + $0x10] sm:$0xff]   ;;  %v4189_v40 = vld [vmem:[%s5379_s3 + $0x18] sm:$0xff]  }
 0x84a   :  { %v1311_v45 = vmul.f32 %v1309_v41, %v1282_v38 }
 0x84c   :  { %v1313_v47 = vadd.f32 %v1311_v45, %v1283_v43 }
 0x84e   :  { %v1314_v48 = vpack.c.bf16 %v1313_v47, %v1312_v46 }
 0x850   :  { %3970 = vmatmul.mubr.msk.bf16.vlgmr.msra.gmra.mrb[40].mxu1 %vm37_vm0, %v1314_v48 }
 0x851   :  { %3989 = vmatprep.mubr.msk.bf16.mxu1 %vm4397_vm1, %v4396_v15  ;;  %3986 = vmatpush3.bf16.msra.mxu1 %v4188_v39 }
 0x852   :  { %3987 = vmatprep.subr.bf16.mxu1 %v4396_v15 }
 0x855   :  { %3988 = vmatpush3.bf16.msra.mxu1 %v4189_v40 }
 0x856   :  { %3993 = vmatprep.subr.bf16.mxu1 %v4396_v15 }
 0x923   :  { %v1369_v54 = vpop.f32.mrb[40].mxu1 }
 0x924   :  { %v1370_v57 = vadd.f32 %v1369_v54, %v1319_v49  ;;  %v3971_v58 = vpop.f32.mrb[41].mxu1 }
 0x925   :  { %v1372_v59 = vpop.f32.mrb[42].mxu1 }
 0x926   :  { %v1376_v60 = vmul.f32 %v1370_v57, %v1370_v57  ;;  %v1373_v0 = vadd.f32 %v1372_v59, %v1319_v49  ;;  %v3972_v1 = vpop.f32.mrb[43].mxu1 }
 0x927   :  { %v1513_v1 = vld [vmem:[%s5380_s2 + $0x22] ss:$0 sm:$0xff] }
 0x928   :  { %v1378_v2 = vmul.f32 %v1376_v60, %v1370_v57  ;;  %v1377_v3 = vmul.f32 %v1373_v0, %v1373_v0 }
 0x92a   :  { %v1380_v4 = vmul.f32 0.044715, %v1378_v2  ;;  %v1379_v5 = vmul.f32 %v1377_v3, %v1373_v0 }
 0x92c   :  { %v1382_v6 = vadd.f32 %v1380_v4, %v1370_v57  ;;  %v1381_v7 = vmul.f32 0.044715, %v1379_v5 }
 0x92e   :  { %v1384_v8 = vmul.f32 0.7978846, %v1382_v6  ;;  %v1383_v9 = vadd.f32 %v1381_v7, %v1373_v0 }
 0x930   :  { %4344 = vtanh.f32 %v1384_v8  ;;  %v1385_v55 = vmul.f32 0.7978846, %v1383_v9 }
 0x932   :  { %4346 = vtanh.f32 %v1385_v55 }
 0x93a   :  { %v4345_v10 = vpop.eup %4344 }
 0x93b   :  { %v1388_v62 = vadd.f32 1.0, %v4345_v10 }
 0x93c   :  { %v4347_v63 = vpop.eup %4346 }
 0x93d   :  { %v1390_v11 = vmul.f32 0.5, %v1388_v62  ;;  %v1389_v12 = vadd.f32 1.0, %v4347_v63 }
 0x93f   :  { %v1391_v13 = vmul.f32 0.5, %v1389_v12  ;;  %v1392_v14 = vmul.f32 %v1390_v11, %v1370_v57  ;;  %v1476_v57 = vld [vmem:[%s5380_s2 + $0x21] ss:$0 sm:$0xff] }
 0x941   :  { %v1393_v16 = vmul.f32 %v1391_v13, %v1373_v0 }
 0x943   :  { %v1394_v17 = vpack.c.bf16 %v1393_v16, %v1392_v14 }
 0x945   :  { %3982 = vmatmul.mubr.msk.bf16.vlgmr.msra.gmra.mrb[44].mxu0 %vm1428_vm4, %v1394_v17 }
 0x946   :  { %4001 = vmatprep.mubr.msk.bf16.mxu0 %vm4397_vm1, %v4396_v15 }
 0xa18   :  { %v1466_v20 = vpop.f32.mrb[44].mxu0 }
 0xa19   :  { %v1467_v21 = vadd.f32 %v1466_v20, %v1403_v19  ;;  %v3983_v22 = vpop.f32.mrb[45].mxu0 }
 0xa1a   :  { %v1469_v24 = vpop.f32.mrb[46].mxu0 }
 0xa1b   :  { %v1470_v26 = vadd.f32 %v1469_v24, %v1403_v19  ;;  %v3984_v29 = vpop.f32.mrb[47].mxu0  ;;  %v1473_v30 = vadd.f32 %v1467_v21, %v1312_v46 }
 0xa1d   :  { %v1477_v33 = vsel %vm37_vm0, %v1473_v30, 0.0  ;;  %v1474_v31 = vadd.f32 %v1470_v26, %v1313_v47 }
 0xa1e   :  { %1478 = vadd.xlane.f32.xlu1 %v1477_v33 }
 0xa1f   :  { %v1480_v32 = vsel %vm37_vm0, %v1474_v31, 0.0 }
 0xa20   :  { %1481 = vadd.xlane.f32.xlu0 %v1480_v32 }
 0xaab   :  { %v1479_v34 = vpop.xlane.xlu1 %1478 }
 0xaac   :  { %v1483_v35 = vmul.f32 0.03125, %v1479_v34 }
 0xaad   :  { %v1482_v37 = vpop.xlane.xlu0 %1481 }
 0xaae   :  { %v1485_v61 = vsub.f32 %v1473_v30, %v1483_v35  ;;  %v1484_v50 = vmul.f32 0.03125, %v1482_v37 }
 0xab0   :  { %v1486_v42 = vsub.f32 %v1474_v31, %v1484_v50  ;;  %v1487_v51 = vmul.f32 %v1485_v61, %v1485_v61 }
 0xab2   :  { %v1489_v28 = vsel %vm37_vm0, %v1487_v51, 0.0  ;;  %v1488_v36 = vmul.f32 %v1486_v42, %v1486_v42 }
 0xab3   :  { %1490 = vadd.xlane.f32.xlu1 %v1489_v28 }
 0xab4   :  { %v1492_v38 = vsel %vm37_vm0, %v1488_v36, 0.0 }
 0xab5   :  { %1493 = vadd.xlane.f32.xlu0 %v1492_v38 }
 0xb40   :  { %v1491_v41 = vpop.xlane.xlu1 %1490 }
 0xb41   :  { %v1495_v43 = vmul.f32 0.03125, %v1491_v41 }
 0xb42   :  { %v1494_v45 = vpop.xlane.xlu0 %1493 }
 0xb43   :  { %v1497_v46 = vadd.f32 1e-05, %v1495_v43  ;;  %v1496_v47 = vmul.f32 0.03125, %v1494_v45 }
 0xb45   :  { %4348 = vrsqrt.f32 %v1497_v46  ;;  %v1498_v48 = vadd.f32 1e-05, %v1496_v47 }
 0xb47   :  { %4350 = vrsqrt.f32 %v1498_v48 }
 0xb4f   :  { %v4349_v56 = vpop.eup %4348 }
 0xb50   :  { %v1501_v44 = vmul.f32 %v4349_v56, %v1485_v61 }
 0xb51   :  { %v4351_v53 = vpop.eup %4350 }
 0xb52   :  { %v1503_v49 = vmul.f32 %v1501_v44, %v1475_v52  ;;  %v1502_v54 = vmul.f32 %v4351_v53, %v1486_v42 }
 0xb54   :  { %v1504_v58 = vmul.f32 %v1502_v54, %v1475_v52  ;;  %v4815_v59 = vadd.f32 %v1503_v49, %v1476_v57 }
 0xb56   :  { %v4817_v60 = vadd.f32 %v1504_v58, %v1476_v57 }
 0xb58   :  { %v1507_v0 = vpack.c.bf16 %v4817_v60, %v4815_v59 }
 0xb5a   :  { %3990 = vmatmul.mubr.msk.bf16.vlgmr.msra.gmra.mrb[44].mxu1 %vm37_vm0, %v1507_v0 }
 0xb5b   :  { %3995 = vmatprep.mubr.msk.bf16.mxu1 %vm4397_vm1, %v4396_v15 }
 0xc2d   :  { %v1563_v2 = vpop.f32.mrb[44].mxu1 }
 0xc2e   :  { %v3991_v3 = vpop.f32.mrb[45].mxu1  ;;  %v1564_v5 = vadd.f32 %v1563_v2, %v1513_v1 }
 0xc2f   :  { %v1566_v4 = vpop.f32.mrb[46].mxu1 }
 0xc30   :  { %v1567_v6 = vadd.f32 %v1566_v4, %v1513_v1  ;;  %v3992_v7 = vpop.f32.mrb[47].mxu1  ;;  %v4830_v9 = vpack.c.bf16 %v1564_v5, %v1564_v5 }
 0xc32   :  { %v4170_v8 = vpack.i.bf16 %v1567_v6, %v1564_v5  ;;  %v4834_v55 = vpack.c.bf16 %v1567_v6, %v1567_v6 }
 0xc34   :  { %4171 = vrot.lane.b32.xlu0 %v4170_v8, %s4398_s22  ;;  %4166 = vrot.lane.b32.xlu1 %v4170_v8, %s4399_s23 }
 0xc38   :  { %4176 = vrot.lane.b32.xlu1 %v4170_v8, %s4400_s24 }
 0xc3c   :  { %1599 = vrot.lane.b32.xlu1 %v4830_v9, %s4401_s25 }
 0xc40   :  { %1648 = vrot.lane.b32.xlu1 %v4834_v55, %s4401_s25 }
 0xca6   :  { %v4172_v10 = vpop.permute.xlu0 %4171  ;;  %v4167_v62 = vpop.permute.xlu1 %4166 }
 0xca7   :  { %v4169_v63 = vunpack.i.h.bf16 %v4167_v62  ;;  %v4168_v11 = vunpack.i.l.bf16 %v4167_v62  ;;  %v4174_v12 = vunpack.i.h.bf16 %v4172_v10  ;;  %v4173_v13 = vunpack.i.l.bf16 %v4172_v10 }
 0xca9   :  { %v4838_v14 = vpack.c.bf16 %v4169_v63, %v4169_v63  ;;  %v4840_v16 = vpack.c.bf16 %v4168_v11, %v4168_v11  ;;  %v4846_v19 = vpack.c.bf16 %v4174_v12, %v4174_v12  ;;  %v4848_v20 = vpack.c.bf16 %v4173_v13, %v4173_v13 }
 0xcaa   :  { %v4177_v17 = vpop.permute.xlu1 %4176 }
 0xcab   :  { %1697 = vrot.lane.b32.xlu0 %v4840_v16, %s4401_s25  ;;  %1746 = vrot.lane.b32.xlu1 %v4838_v14, %s4401_s25  ;;  %v4179_v21 = vunpack.i.h.bf16 %v4177_v17  ;;  %v4178_v22 = vunpack.i.l.bf16 %v4177_v17 }
 0xcad   :  { %v4855_v29 = vpack.c.bf16 %v4179_v21, %v4179_v21  ;;  %v4857_v30 = vpack.c.bf16 %v4178_v22, %v4178_v22 }
 0xcae   :  { %v1600_v24 = vpop.permute.xlu1 %1599 }
 0xcaf   :  { %v1605_v26 = vsel %vm196_vm2, %v1600_v24, 0  ;;  %1795 = vrot.lane.b32.xlu0 %v4848_v20, %s4401_s25  ;;  %1844 = vrot.lane.b32.xlu1 %v4846_v19, %s4401_s25 }
 0xcb0   :  { %3994 = vmatpush3.bf16.xpose.msra.mxu1 %v1605_v26 }
 0xcb1   :  { %4005 = vmatprep.subr.bf16.mxu1 %v4396_v15 }
 0xcb2   :  { %v1649_v33 = vpop.permute.xlu1 %1648 }
 0xcb3   :  { %v1654_v31 = vsel %vm196_vm2, %v1649_v33, 0  ;;  %1893 = vrot.lane.b32.xlu0 %v4857_v30, %s4401_s25  ;;  %1942 = vrot.lane.b32.xlu1 %v4855_v29, %s4401_s25 }
 0xcb4   :  { %4000 = vmatpush3.bf16.xpose.msra.mxu0 %v1654_v31 }
 0xcb5   :  { %4011 = vmatprep.subr.bf16.mxu0 %v4396_v15 }
 0xcb7   :  { %3996 = vmatmul.mubr.msk.bf16.vlgmr.msra.gmra.mrb[48].mxu1 %vm196_vm2, %v4830_v9 }
 0xcb8   :  { %4007 = vmatprep.mubr.msk.bf16.mxu1 %vm4397_vm1, %v4396_v15 }
 0xcbb   :  { %4002 = vmatmul.mubr.msk.bf16.vlgmr.msra.gmra.mrb[48].mxu0 %vm196_vm2, %v4834_v55 }
 0xcbc   :  { %4013 = vmatprep.mubr.msk.bf16.mxu0 %vm4397_vm1, %v4396_v15 }
 0xd1d   :  { %v1698_v32 = vpop.permute.xlu0 %1697  ;;  %v1747_v34 = vpop.permute.xlu1 %1746 }
 0xd1e   :  { %v1703_v35 = vsel %vm196_vm2, %v1698_v32, 0  ;;  %v1752_v37 = vsel %vm196_vm2, %v1747_v34, 0 }
 0xd1f   :  { %4006 = vmatpush3.bf16.xpose.msra.mxu1 %v1703_v35  ;;  %4012 = vmatpush3.bf16.xpose.msra.mxu0 %v1752_v37 }
 0xd20   :  { %4017 = vmatprep.subr.bf16.mxu1 %v4396_v15  ;;  %4023 = vmatprep.subr.bf16.mxu0 %v4396_v15 }
 0xd21   :  { %v1796_v61 = vpop.permute.xlu0 %1795  ;;  %v1845_v50 = vpop.permute.xlu1 %1844 }
 0xd22   :  { %v1801_v42 = vsel %vm196_vm2, %v1796_v61, 0  ;;  %v1850_v51 = vsel %vm196_vm2, %v1845_v50, 0 }
 0xd25   :  { %v1894_v28 = vpop.permute.xlu0 %1893  ;;  %v1943_v36 = vpop.permute.xlu1 %1942 }
 0xd26   :  { %4008 = vmatmul.mubr.msk.bf16.vlgmr.msra.gmra.mrb[52].mxu1 %vm196_vm2, %v4840_v16  ;;  %4014 = vmatmul.mubr.msk.bf16.vlgmr.msra.gmra.mrb[52].mxu0 %vm196_vm2, %v4838_v14  ;;  %v1899_v38 = vsel %vm196_vm2, %v1894_v28, 0  ;;  %v1948_v39 = vsel %vm196_vm2, %v1943_v36, 0 }
 0xd27   :  { %4018 = vmatpush3.bf16.xpose.msra.mxu1 %v1801_v42  ;;  %4024 = vmatpush3.bf16.xpose.msra.mxu0 %v1850_v51 }
 0xd28   :  { %4019 = vmatprep.mubr.msk.bf16.mxu1 %vm4397_vm1, %v4396_v15  ;;  %4025 = vmatprep.mubr.msk.bf16.mxu0 %vm4397_vm1, %v4396_v15 }
 0xd29   :  { %4029 = vmatprep.subr.bf16.mxu1 %v4396_v15  ;;  %4035 = vmatprep.subr.bf16.mxu0 %v4396_v15 }
 0xd2e   :  { %4020 = vmatmul.mubr.msk.bf16.vlgmr.msra.gmra.mrb[56].mxu1 %vm196_vm2, %v4848_v20  ;;  %4026 = vmatmul.mubr.msk.bf16.vlgmr.msra.gmra.mrb[56].mxu0 %vm196_vm2, %v4846_v19 }
 0xd2f   :  { %4030 = vmatpush3.bf16.xpose.msra.mxu1 %v1899_v38  ;;  %4036 = vmatpush3.bf16.xpose.msra.mxu0 %v1948_v39 }
 0xd30   :  { %4031 = vmatprep.mubr.msk.bf16.mxu1 %vm4397_vm1, %v4396_v15  ;;  %4037 = vmatprep.mubr.msk.bf16.mxu0 %vm4397_vm1, %v4396_v15 }
 0xd31   :  { %4047 = vmatprep.subr.bf16.mxu0 %v4396_v15  ;;  %4041 = vmatprep.subr.bf16.mxu1 %v4396_v15 }
 0xd36   :  { %4032 = vmatmul.mubr.msk.bf16.vlgmr.msra.gmra.mrb[60].mxu1 %vm196_vm2, %v4857_v30  ;;  %4038 = vmatmul.mubr.msk.bf16.vlgmr.msra.gmra.mrb[60].mxu0 %vm196_vm2, %v4855_v29 }
 0xd37   :  { %4043 = vmatprep.mubr.msk.bf16.mxu1 %vm4397_vm1, %v4396_v15  ;;  %4049 = vmatprep.mubr.msk.bf16.mxu0 %vm4397_vm1, %v4396_v15 }
 0xd8a   :  { %v1641_v40 = vpop.f32.mrb[48].mxu1 }
 0xd8b   :  { %v1642_v41 = vadd.f32 %v1641_v40, %v4592_v27  ;;  %v3997_v43 = vpop.f32.mrb[49].mxu1 }
 0xd8c   :  { %v1644_v45 = vpop.f32.mrb[50].mxu1 }
 0xd8d   :  { %v3998_v46 = vpop.f32.mrb[51].mxu1  ;;  %v1990_v47 = vsel %vm196_vm2, %v1642_v41, -inf }
 0xd8e   :  { %1991 = vmax.xlane.f32.xlu0 %v1990_v47  ;;  %v1690_v48 = vpop.f32.mrb[48].mxu0 }
 0xd8f   :  { %v1691_v56 = vadd.f32 %v1690_v48, %v4589_v25  ;;  %v4003_v52 = vpop.f32.mrb[49].mxu0 }
 0xd90   :  { %v1693_v44 = vpop.f32.mrb[50].mxu0 }
 0xd91   :  { %v4004_v53 = vpop.f32.mrb[51].mxu0  ;;  %v1993_v49 = vsel %vm196_vm2, %v1691_v56, -inf }
 0xd92   :  { %1994 = vmax.xlane.f32.xlu1 %v1993_v49 }
 0xdf9   :  { %v1739_v54 = vpop.f32.mrb[52].mxu1  ;;  %v1788_v57 = vpop.f32.mrb[52].mxu0 }
 0xdfa   :  { %v1740_v58 = vadd.f32 %v1739_v54, %v4592_v27  ;;  %v4009_v0 = vpop.f32.mrb[53].mxu1  ;;  %v4015_v1 = vpop.f32.mrb[53].mxu0  ;;  %v1789_v4 = vadd.f32 %v1788_v57, %v4589_v25 }
 0xdfb   :  { %v1742_v2 = vpop.f32.mrb[54].mxu1  ;;  %v1791_v3 = vpop.f32.mrb[54].mxu0 }
 0xdfc   :  { %v4010_v5 = vpop.f32.mrb[55].mxu1  ;;  %v4016_v6 = vpop.f32.mrb[55].mxu0  ;;  %v1996_v7 = vsel %vm196_vm2, %v1740_v58, -inf  ;;  %v1999_v8 = vsel %vm196_vm2, %v1789_v4, -inf }
 0xdfd   :  { %1997 = vmax.xlane.f32.xlu0 %v1996_v7 }
 0xe01   :  { %v1837_v10 = vpop.f32.mrb[56].mxu1  ;;  %2000 = vmax.xlane.f32.xlu0 %v1999_v8  ;;  %v1886_v62 = vpop.f32.mrb[56].mxu0 }
 0xe02   :  { %v4919_v63 = vadd.f32 %v1837_v10, %v4592_v27  ;;  %v1887_v11 = vadd.f32 %v1886_v62, %v4589_v25  ;;  %v4021_v12 = vpop.f32.mrb[57].mxu1  ;;  %v4027_v13 = vpop.f32.mrb[57].mxu0 }
 0xe03   :  { %v1840_v17 = vpop.f32.mrb[58].mxu1  ;;  %v1889_v21 = vpop.f32.mrb[58].mxu0 }
 0xe04   :  { %v4022_v22 = vpop.f32.mrb[59].mxu1  ;;  %v4028_v24 = vpop.f32.mrb[59].mxu0  ;;  %v2002_v26 = vsel %vm196_vm2, %v4919_v63, -inf  ;;  %v2005_v33 = vsel %vm196_vm2, %v1887_v11, -inf }
 0xe05   :  { %2003 = vmax.xlane.f32.xlu0 %v2002_v26  ;;  %2006 = vmax.xlane.f32.xlu1 %v2005_v33 }
 0xe09   :  { %v1935_v31 = vpop.f32.mrb[60].mxu1  ;;  %v1984_v32 = vpop.f32.mrb[60].mxu0 }
 0xe0a   :  { %v4926_v34 = vadd.f32 %v1935_v31, %v4592_v27  ;;  %v4033_v35 = vpop.f32.mrb[61].mxu1  ;;  %v4039_v37 = vpop.f32.mrb[61].mxu0  ;;  %v1985_v39 = vadd.f32 %v1984_v32, %v4589_v25 }
 0xe0b   :  { %v1938_v61 = vpop.f32.mrb[62].mxu1  ;;  %v1987_v50 = vpop.f32.mrb[62].mxu0 }
 0xe0c   :  { %v4034_v42 = vpop.f32.mrb[63].mxu1  ;;  %v4040_v51 = vpop.f32.mrb[63].mxu0  ;;  %v2008_v28 = vsel %vm196_vm2, %v4926_v34, -inf  ;;  %v2011_v40 = vsel %vm196_vm2, %v1985_v39, -inf }
 0xe0d   :  { %2009 = vmax.xlane.f32.xlu0 %v2008_v28 }
 0xe16   :  { %2134 = vrot.lane.b32.xlu1 %v4834_v55, %s4402_s26 }
 0xe1a   :  { %2182 = vrot.lane.b32.xlu1 %v4840_v16, %s4402_s26 }
 0xe1b   :  { %v1992_v27 = vpop.xlane.xlu0 %1991 }
 0xe1c   :  { %v2014_v36 = vsub.f32 %v1642_v41, %v1992_v27 }
 0xe1e   :  { %v2022_v38 = vmul.f32 1.442695, %v2014_v36 }
 0xe1f   :  { %v1995_v16 = vpop.xlane.xlu1 %1994 }
 0xe20   :  { %4352 = vpow2.f32 %v2022_v38 }
 0xe23   :  { %2086 = vrot.lane.b32.xlu0 %v4830_v9, %s4402_s26  ;;  %v2015_v9 = vsub.f32 %v1691_v56, %v1995_v16 }
 0xe25   :  { %v2024_v45 = vmul.f32 1.442695, %v2015_v9 }
 0xe27   :  { %4354 = vpow2.f32 %v2024_v45 }
 0xe2a   :  { %v4938_v43 = vpop.eup %4352 }
 0xe2b   :  { %v2038_v55 = vsel %vm196_vm2, %v4938_v43, 0.0 }
 0xe31   :  { %v4944_v41 = vpop.eup %4354 }
 0xe32   :  { %v2041_v25 = vsel %vm196_vm2, %v4944_v41, 0.0 }
 0xe3e   :  { %2012 = vmax.xlane.f32.xlu1 %v2011_v40 }
 0xe42   :  { %2039 = vadd.xlane.f32.xlu0 %v2038_v55 }
 0xe4f   :  { %2230 = vrot.lane.b32.xlu1 %v4838_v14, %s4402_s26 }
 0xe73   :  { %2042 = vadd.xlane.f32.xlu1 %v2041_v25 }
 0xe84   :  { %2326 = vrot.lane.b32.xlu1 %v4846_v19, %s4402_s26 }
 0xe8a   :  { %v1998_v46 = vpop.xlane.xlu0 %1997 }
 0xe8b   :  { %v2016_v47 = vsub.f32 %v1740_v58, %v1998_v46 }
 0xe8d   :  { %v2026_v48 = vmul.f32 1.442695, %v2016_v47 }
 0xe8e   :  { %v2001_v52 = vpop.xlane.xlu0 %2000 }
 0xe8f   :  { %4356 = vpow2.f32 %v2026_v48  ;;  %v2017_v44 = vsub.f32 %v1789_v4, %v2001_v52 }
 0xe91   :  { %v2028_v53 = vmul.f32 1.442695, %v2017_v44 }
 0xe92   :  { %v2007_v14 = vpop.xlane.xlu1 %2006  ;;  %v2004_v56 = vpop.xlane.xlu0 %2003 }
 0xe93   :  { %v2019_v49 = vsub.f32 %v1887_v11, %v2007_v14  ;;  %4358 = vpow2.f32 %v2028_v53  ;;  %v2018_v8 = vsub.f32 %v4919_v63, %v2004_v56 }
 0xe95   :  { %v2032_v19 = vmul.f32 1.442695, %v2019_v49  ;;  %v2030_v10 = vmul.f32 1.442695, %v2018_v8  ;;  %v3632_v8 = vld [vmem:[%s5382_s4 + $0x14] sm:$0xf] }
 0xe96   :  { %v2135_v54 = vpop.permute.xlu1 %2134 }
 0xe97   :  { %v2140_v57 = vsel %vm687_vm3, %v2135_v54, 0  ;;  %4360 = vpow2.f32 %v2032_v19 }
 0xe98   :  { %4048 = vmatpush3.bf16.msra.mxu0 %v2140_v57  ;;  %4362 = vpow2.f32 %v2030_v10  ;;  %v2530_v10 = vsel %vm687_vm3, %v3632_v8, 0 }
 0xe99   :  { %v4951_v0 = vpop.eup %4356  ;;  %4059 = vmatprep.subr.bf16.mxu0 %v4396_v15 }
 0xe9a   :  { %v2010_v1 = vpop.xlane.xlu0 %2009  ;;  %v2044_v58 = vsel %vm196_vm2, %v4951_v0, 0.0  ;;  %v2183_v12 = vpop.permute.xlu1 %2182 }
 0xe9b   :  { %2045 = vadd.xlane.f32.xlu0 %v2044_v58  ;;  %v2020_v62 = vsub.f32 %v4926_v34, %v2010_v1  ;;  %v2188_v37 = vsel %vm687_vm3, %v2183_v12, 0 }
 0xe9d   :  { %v4958_v4 = vpop.eup %4358  ;;  %v2034_v11 = vmul.f32 1.442695, %v2020_v62 }
 0xe9e   :  { %v2087_v2 = vpop.permute.xlu0 %2086  ;;  %v2047_v5 = vsel %vm196_vm2, %v4958_v4, 0.0 }
 0xe9f   :  { %v2092_v3 = vsel %vm687_vm3, %v2087_v2, 0  ;;  %4364 = vpow2.f32 %v2034_v11  ;;  %v3631_v2 = vld [vmem:[%s5382_s4 + $0x10] sm:$0xf] }
 0xea0   :  { %4042 = vmatpush3.bf16.msra.mxu1 %v2092_v3 }
 0xea1   :  { %4053 = vmatprep.subr.bf16.mxu1 %v4396_v15  ;;  %v4962_v6 = vpop.eup %4360 }
 0xea2   :  { %v2053_v7 = vsel %vm196_vm2, %v4962_v6, 0.0  ;;  %v4970_v17 = vpop.eup %4362 }
 0xea3   :  { %v2050_v26 = vsel %vm196_vm2, %v4970_v17, 0.0 }
 0xea8   :  { %2048 = vadd.xlane.f32.xlu1 %v2047_v5 }
 0xea9   :  { %v4974_v33 = vpop.eup %4364 }
 0xeac   :  { %2054 = vadd.xlane.f32.xlu1 %v2053_v7 }
 0xeb1   :  { %2278 = vrot.lane.b32.xlu0 %v4848_v20, %s4402_s26  ;;  %v2056_v20 = vsel %vm196_vm2, %v4974_v33, 0.0 }
 0xecb   :  { %v2013_v13 = vpop.xlane.xlu1 %2012 }
 0xecc   :  { %v2021_v21 = vsub.f32 %v1985_v39, %v2013_v13 }
 0xece   :  { %v2036_v22 = vmul.f32 1.442695, %v2021_v21 }
 0xecf   :  { %v2040_v24 = vpop.xlane.xlu0 %2039  ;;  %v2231_v61 = vpop.permute.xlu1 %2230 }
 0xed0   :  { %4366 = vpow2.f32 %v2036_v22  ;;  %2051 = vadd.xlane.f32.xlu0 %v2050_v26  ;;  %v2236_v27 = vsel %vm687_vm3, %v2231_v61, 0 }
 0xed1   :  { %4368 = vrcp.f32 %v2040_v24 }
 0xed4   :  { %2057 = vadd.xlane.f32.xlu0 %v2056_v20 }
 0xeda   :  { %v4978_v63 = vpop.eup %4366 }
 0xedb   :  { %v4369_v31 = vpop.eup %4368  ;;  %v2059_v32 = vsel %vm196_vm2, %v4978_v63, 0.0 }
 0xedc   :  { %v2070_v34 = vmul.f32 %v4369_v31, %v4938_v43  ;;  %2060 = vadd.xlane.f32.xlu1 %v2059_v32 }
 0xede   :  { %v2078_v35 = vpack.c.bf16 %v2070_v34, %v2070_v34 }
 0xee0   :  { %4044 = vmatmul.mubr.msk.bf16.vlgmr.msra.gmra.mrb[64].mxu1 %vm196_vm2, %v2078_v35  ;;  %v3634_v35 = vld [vmem:[%s5382_s4 + $0x1c] sm:$0xf] }
 0xee1   :  { %4054 = vmatpush3.bf16.msra.mxu1 %v2188_v37  ;;  %4055 = vmatprep.mubr.msk.bf16.mxu1 %vm4397_vm1, %v4396_v15 }
 0xee2   :  { %4065 = vmatprep.subr.bf16.mxu1 %v4396_v15 }
 0xeea   :  { %2374 = vrot.lane.b32.xlu0 %v4857_v30, %s4402_s26 }
 0xeed   :  { %2422 = vrot.lane.b32.xlu1 %v4855_v29, %s4402_s26 }
 0xf00   :  { %v2043_v50 = vpop.xlane.xlu1 %2042 }
 0xf01   :  { %4370 = vrcp.f32 %v2043_v50 }
 0xf04   :  { %v2327_v29 = vpop.permute.xlu1 %2326 }
 0xf05   :  { %v2332_v46 = vsel %vm687_vm3, %v2327_v29, 0 }
 0xf0b   :  { %v4371_v42 = vpop.eup %4370 }
 0xf0c   :  { %v2071_v51 = vmul.f32 %v4371_v42, %v4944_v41  ;;  %v2624_v42 = vsel %vm687_vm3, %v3634_v35, 0 }
 0xf0e   :  { %v2079_v28 = vpack.c.bf16 %v2071_v51, %v2071_v51 }
 0xf10   :  { %4050 = vmatmul.mubr.msk.bf16.vlgmr.msra.gmra.mrb[64].mxu0 %vm196_vm2, %v2079_v28 }
 0xf11   :  { %4060 = vmatpush3.bf16.msra.mxu0 %v2236_v27  ;;  %4061 = vmatprep.mubr.msk.bf16.mxu0 %vm4397_vm1, %v4396_v15 }
 0xf12   :  { %4071 = vmatprep.subr.bf16.mxu0 %v4396_v15 }
 0xf28   :  { %v2046_v30 = vpop.xlane.xlu0 %2045 }
 0xf29   :  { %4372 = vrcp.f32 %v2046_v30 }
 0xf2c   :  { %v2279_v39 = vpop.permute.xlu0 %2278 }
 0xf2d   :  { %v2284_v55 = vsel %vm687_vm3, %v2279_v39, 0 }
 0xf33   :  { %v4373_v36 = vpop.eup %4372 }
 0xf34   :  { %v2072_v38 = vmul.f32 %v4373_v36, %v4951_v0 }
 0xf35   :  { %v2049_v40 = vpop.xlane.xlu1 %2048 }
 0xf36   :  { %4374 = vrcp.f32 %v2049_v40  ;;  %v2080_v43 = vpack.c.bf16 %v2072_v38, %v2072_v38 }
 0xf38   :  { %4056 = vmatmul.mubr.msk.bf16.vlgmr.msra.gmra.mrb[68].mxu1 %vm196_vm2, %v2080_v43 }
 0xf39   :  { %4066 = vmatpush3.bf16.msra.mxu1 %v2284_v55  ;;  %v2055_v16 = vpop.xlane.xlu1 %2054  ;;  %4067 = vmatprep.mubr.msk.bf16.mxu1 %vm4397_vm1, %v4396_v15 }
 0xf3a   :  { %4376 = vrcp.f32 %v2055_v16  ;;  %4077 = vmatprep.subr.bf16.mxu1 %v4396_v15 }
 0xf40   :  { %v4375_v9 = vpop.eup %4374 }
 0xf41   :  { %v2073_v45 = vmul.f32 %v4375_v9, %v4958_v4  ;;  %v2483_v4 = vsel %vm687_vm3, %v3631_v2, 0 }
 0xf43   :  { %v2081_v41 = vpack.c.bf16 %v2073_v45, %v2073_v45 }
 0xf44   :  { %v4377_v25 = vpop.eup %4376 }
 0xf45   :  { %4062 = vmatmul.mubr.msk.bf16.vlgmr.msra.gmra.mrb[68].mxu0 %vm196_vm2, %v2081_v41  ;;  %v2075_v47 = vmul.f32 %v4377_v25, %v4962_v6 }
 0xf46   :  { %4072 = vmatpush3.bf16.msra.mxu0 %v2332_v46  ;;  %4073 = vmatprep.mubr.msk.bf16.mxu0 %vm4397_vm1, %v4396_v15 }
 0xf47   :  { %4083 = vmatprep.subr.bf16.mxu0 %v4396_v15  ;;  %v2083_v48 = vpack.c.bf16 %v2075_v47, %v2075_v47 }
 0xf4d   :  { %4074 = vmatmul.mubr.msk.bf16.vlgmr.msra.gmra.mrb[72].mxu0 %vm196_vm2, %v2083_v48 }
 0xf4e   :  { %4085 = vmatprep.mubr.msk.bf16.mxu0 %vm4397_vm1, %v4396_v15 }
 0xf5d   :  { %v2052_v52 = vpop.xlane.xlu0 %2051 }
 0xf5e   :  { %4378 = vrcp.f32 %v2052_v52 }
 0xf61   :  { %v2058_v44 = vpop.xlane.xlu0 %2057 }
 0xf62   :  { %4380 = vrcp.f32 %v2058_v44 }
 0xf65   :  { %v2375_v49 = vpop.permute.xlu0 %2374 }
 0xf66   :  { %v2380_v0 = vsel %vm687_vm3, %v2375_v49, 0 }
 0xf68   :  { %v4379_v14 = vpop.eup %4378 }
 0xf69   :  { %v2074_v53 = vmul.f32 %v4379_v14, %v4970_v17  ;;  %v2061_v56 = vpop.xlane.xlu1 %2060  ;;  %v3633_v17 = vld [vmem:[%s5382_s4 + $0x18] sm:$0xf] }
 0xf6a   :  { %4382 = vrcp.f32 %v2061_v56  ;;  %v2577_v26 = vsel %vm687_vm3, %v3633_v17, 0 }
 0xf6b   :  { %v2082_v54 = vpack.c.bf16 %v2074_v53, %v2074_v53 }
 0xf6c   :  { %v4381_v57 = vpop.eup %4380 }
 0xf6d   :  { %4068 = vmatmul.mubr.msk.bf16.vlgmr.msra.gmra.mrb[72].mxu1 %vm196_vm2, %v2082_v54  ;;  %v2423_v19 = vpop.permute.xlu1 %2422  ;;  %v2076_v58 = vmul.f32 %v4381_v57, %v4974_v33 }
 0xf6e   :  { %4078 = vmatpush3.bf16.msra.mxu1 %v2380_v0  ;;  %v2428_v1 = vsel %vm687_vm3, %v2423_v19, 0  ;;  %4079 = vmatprep.mubr.msk.bf16.mxu1 %vm4397_vm1, %v4396_v15 }
 0xf6f   :  { %4084 = vmatpush3.bf16.msra.mxu0 %v2428_v1  ;;  %4089 = vmatprep.subr.bf16.mxu1 %v4396_v15  ;;  %v2084_v3 = vpack.c.bf16 %v2076_v58, %v2076_v58 }
 0xf70   :  { %4095 = vmatprep.subr.bf16.mxu0 %v4396_v15 }
 0xf74   :  { %v4383_v5 = vpop.eup %4382 }
 0xf75   :  { %v2077_v6 = vmul.f32 %v4383_v5, %v4978_v63  ;;  %4080 = vmatmul.mubr.msk.bf16.vlgmr.msra.gmra.mrb[76].mxu1 %vm196_vm2, %v2084_v3 }
 0xf76   :  { %4090 = vmatpush3.bf16.msra.mxu1 %v2483_v4  ;;  %4091 = vmatprep.mubr.msk.bf16.mxu1 %vm4397_vm1, %v4396_v15 }
 0xf77   :  { %v2085_v7 = vpack.c.bf16 %v2077_v6, %v2077_v6  ;;  %4101 = vmatprep.subr.bf16.mxu1 %v4396_v15 }
 0xf79   :  { %4086 = vmatmul.mubr.msk.bf16.vlgmr.msra.gmra.mrb[76].mxu0 %vm196_vm2, %v2085_v7 }
 0xf7a   :  { %4097 = vmatprep.mubr.msk.bf16.mxu0 %vm4397_vm1, %v4396_v15  ;;  %4096 = vmatpush3.bf16.msra.mxu0 %v2530_v10 }
 0xf7b   :  { %4107 = vmatprep.subr.bf16.mxu0 %v4396_v15 }
 0xfb3   :  { %v2128_v62 = vpop.f32.mrb[64].mxu1 }
 0xfb4   :  { %v4045_v11 = vpop.f32.mrb[65].mxu1 }
 0xfb5   :  { %v2131_v12 = vpop.f32.mrb[66].mxu1 }
 0xfb6   :  { %v4046_v13 = vpop.f32.mrb[67].mxu1 }
 0xfe3   :  { %v2176_v21 = vpop.f32.mrb[64].mxu0 }
 0xfe4   :  { %v2470_v22 = vpack.c.bf16 %v2176_v21, %v2128_v62  ;;  %v4051_v24 = vpop.f32.mrb[65].mxu0  ;;  %v2681_v21 = vld [vmem:[%s5380_s2 + $0x23] ss:$0 sm:$0xff] }
 0xfe5   :  { %v2179_v33 = vpop.f32.mrb[66].mxu0 }
 0xfe6   :  { %v4052_v20 = vpop.f32.mrb[67].mxu0  ;;  %4092 = vmatmul.mubr.msk.bf16.vlgmr.msra.gmra.mrb[80].mxu1 %vm196_vm2, %v2470_v22 }
 0xfe7   :  { %4102 = vmatpush3.bf16.msra.mxu1 %v2577_v26  ;;  %4103 = vmatprep.mubr.msk.bf16.mxu1 %vm4397_vm1, %v4396_v15 }
 0xfe8   :  { %4113 = vmatprep.subr.bf16.mxu1 %v4396_v15 }
0x100b   :  { %v2224_v63 = vpop.f32.mrb[68].mxu1 }
0x100c   :  { %v4057_v31 = vpop.f32.mrb[69].mxu1 }
0x100d   :  { %v2227_v32 = vpop.f32.mrb[70].mxu1 }
0x100e   :  { %v4058_v34 = vpop.f32.mrb[71].mxu1 }
0x1018   :  { %v2272_v37 = vpop.f32.mrb[68].mxu0 }
0x1019   :  { %v2471_v61 = vpack.c.bf16 %v2272_v37, %v2224_v63  ;;  %v4063_v50 = vpop.f32.mrb[69].mxu0 }
0x101a   :  { %v2275_v51 = vpop.f32.mrb[70].mxu0 }
0x101b   :  { %v4064_v28 = vpop.f32.mrb[71].mxu0  ;;  %4098 = vmatmul.mubr.msk.bf16.vlgmr.msra.gmra.mrb[80].mxu0 %vm196_vm2, %v2471_v61 }
0x101c   :  { %4108 = vmatpush3.bf16.msra.mxu0 %v2624_v42  ;;  %4109 = vmatprep.mubr.msk.bf16.mxu0 %vm4397_vm1, %v4396_v15 }
0x101d   :  { %4121 = vmatprep.subr.bf16.mxu0 %v4396_v15 }
0x1020   :  { %v2368_v27 = vpop.f32.mrb[72].mxu0 }
0x1021   :  { %v4075_v30 = vpop.f32.mrb[73].mxu0 }
0x1022   :  { %v2371_v29 = vpop.f32.mrb[74].mxu0 }
0x1023   :  { %v4076_v36 = vpop.f32.mrb[75].mxu0 }
0x1040   :  { %v2320_v38 = vpop.f32.mrb[72].mxu1 }
0x1041   :  { %v2472_v39 = vpack.c.bf16 %v2368_v27, %v2320_v38  ;;  %v4069_v40 = vpop.f32.mrb[73].mxu1 }
0x1042   :  { %v2323_v43 = vpop.f32.mrb[74].mxu1 }
0x1043   :  { %v4070_v55 = vpop.f32.mrb[75].mxu1  ;;  %4104 = vmatmul.mubr.msk.bf16.vlgmr.msra.gmra.mrb[84].mxu1 %vm196_vm2, %v2472_v39  ;;  %v4191_v39 = vld [vmem:[%s5383_s5 + $0x18] sm:$0xff]  }
0x1044   :  { %4117 = vmatprep.mubr.msk.bf16.mxu1 %vm4397_vm1, %v4396_v15 }
0x1048   :  { %v2416_v16 = vpop.f32.mrb[76].mxu1 }
0x1049   :  { %v4081_v9 = vpop.f32.mrb[77].mxu1 }
0x104a   :  { %v2419_v45 = vpop.f32.mrb[78].mxu1 }
0x104b   :  { %v4082_v41 = vpop.f32.mrb[79].mxu1 }
0x104c   :  { %v2464_v25 = vpop.f32.mrb[76].mxu0 }
0x104d   :  { %v2473_v46 = vpack.c.bf16 %v2464_v25, %v2416_v16  ;;  %v4087_v47 = vpop.f32.mrb[77].mxu0 }
0x104e   :  { %v2467_v48 = vpop.f32.mrb[78].mxu0 }
0x104f   :  { %v4088_v52 = vpop.f32.mrb[79].mxu0  ;;  %4110 = vmatmul.mubr.msk.bf16.vlgmr.msra.gmra.mrb[84].mxu0 %vm196_vm2, %v2473_v46  ;;  %v2686_v46 = vld [vmem:[%s5380_s2 + $0x26] ss:$0 sm:$0xff] }
0x1050   :  { %4129 = vmatprep.mubr.msk.bf16.mxu0 %vm4397_vm1, %v4396_v15 }
0x10b9   :  { %v2519_v44 = vpop.f32.mrb[80].mxu1 }
0x10ba   :  { %v4093_v14 = vpop.f32.mrb[81].mxu1  ;;  %v2667_v54 = vsel %vm37_vm0, %v2519_v44, 0.0  ;;  %v2687_v44 = vld [vmem:[%s5380_s2 + $0x27] ss:$0 sm:$0xff] }
0x10bb   :  { %v2522_v53 = vpop.f32.mrb[82].mxu1 }
0x10bc   :  { %v4094_v56 = vpop.f32.mrb[83].mxu1  ;;  %v2674_v58 = vsel %vm37_vm0, %v2522_v53, 0.0 }
0x10ee   :  { %v2566_v49 = vpop.f32.mrb[80].mxu0 }
0x10ef   :  { %v2668_v57 = vsel %vm37_vm0, %v2566_v49, 0.0  ;;  %v4099_v0 = vpop.f32.mrb[81].mxu0 }
0x10f0   :  { %v2669_v19 = vadd.f32 %v2668_v57, %v2667_v54  ;;  %v2569_v1 = vpop.f32.mrb[82].mxu0  ;;  %v4192_v54 = vld [vmem:[%s5384_s6 + $0x20] sm:$0xff]   ;;  %v4193_v57 = vld [vmem:[%s5384_s6 + $0x28] sm:$0xff]   ;;  %v4194_v0 = vld [vmem:[%s5384_s6 + $0x30] sm:$0xff]  }
0x10f1   :  { %v2675_v2 = vsel %vm37_vm0, %v2569_v1, 0.0  ;;  %v4100_v3 = vpop.f32.mrb[83].mxu0  ;;  %4122 = vmatpush3.bf16.msra.mxu0 %v4192_v54  ;;  %v2724_v1 = vld [vmem:[%s5380_s2 + $0x24] ss:$0 sm:$0xff] }
0x10f2   :  { %v2676_v4 = vadd.f32 %v2675_v2, %v2674_v58  ;;  %4123 = vmatprep.subr.bf16.mxu0 %v4396_v15  ;;  %v4231_v54 = vld [vmem:[%s5386_s8 + $0x124] ss:$8 sps:$4 sm:$0xff]  }
0x10f5   :  { %4124 = vmatpush3.bf16.msra.mxu0 %v4193_v57  ;;  %v4235_v57 = vld [vmem:[%s5386_s8 + $0x130] ss:$8 sps:$4 sm:$0xff]  }
0x10f6   :  { %4125 = vmatprep.subr.bf16.mxu0 %v4396_v15 }
0x10f9   :  { %4126 = vmatpush3.bf16.msra.mxu0 %v4194_v0  ;;  %v4237_v0 = vld [vmem:[%s5386_s8 + $0x134] ss:$8 sps:$4 sm:$0xff]  }
0x10fa   :  { %4127 = vmatprep.subr.bf16.mxu0 %v4396_v15 }
0x1116   :  { %v2613_v5 = vpop.f32.mrb[84].mxu1 }
0x1117   :  { %v2670_v6 = vsel %vm37_vm0, %v2613_v5, 0.0  ;;  %v4105_v7 = vpop.f32.mrb[85].mxu1 }
0x1118   :  { %v2671_v8 = vadd.f32 %v2670_v6, %v2669_v19  ;;  %v2616_v10 = vpop.f32.mrb[86].mxu1  ;;  %v4195_v19 = vld [vmem:[%s5384_s6 + $0x38] sm:$0xff]  }
0x1119   :  { %v2677_v62 = vsel %vm37_vm0, %v2616_v10, 0.0  ;;  %v4106_v11 = vpop.f32.mrb[87].mxu1  ;;  %4128 = vmatpush3.bf16.msra.mxu0 %v4195_v19  ;;  %v4241_v19 = vld [vmem:[%s5386_s8 + $0x140] ss:$8 sps:$4 sm:$0xff]  }
0x111a   :  { %v2678_v12 = vadd.f32 %v2677_v62, %v2676_v4 }
0x1122   :  { %v2660_v13 = vpop.f32.mrb[84].mxu0 }
0x1123   :  { %v2672_v17 = vsel %vm37_vm0, %v2660_v13, 0.0  ;;  %v4111_v22 = vpop.f32.mrb[85].mxu0 }
0x1124   :  { %v2673_v24 = vadd.f32 %v2672_v17, %v2671_v8  ;;  %v2663_v26 = vpop.f32.mrb[86].mxu0 }
0x1125   :  { %v2679_v33 = vsel %vm37_vm0, %v2663_v26, 0.0  ;;  %v4112_v20 = vpop.f32.mrb[87].mxu0 }
0x1126   :  { %v2682_v63 = vadd.f32 %v2681_v21, %v2673_v24  ;;  %v2680_v31 = vadd.f32 %v2679_v33, %v2678_v12 }
0x1128   :  { %v2683_v32 = vadd.f32 %v2681_v21, %v2680_v31  ;;  %v2684_v34 = vadd.f32 %v2682_v63, %v4815_v59 }
0x112a   :  { %v2688_v35 = vsel %vm37_vm0, %v2684_v34, 0.0  ;;  %v2685_v37 = vadd.f32 %v2683_v32, %v4817_v60  ;;  %v4190_v60 = vld [vmem:[%s5383_s5 + $0x10] sm:$0xff]  }
0x112b   :  { %2689 = vadd.xlane.f32.xlu0 %v2688_v35  ;;  %4114 = vmatpush3.bf16.msra.mxu1 %v4190_v60  ;;  %v2809_v35 = vld [vmem:[%s5380_s2 + $0x25] ss:$0 sm:$0xff] }
0x112c   :  { %v2691_v61 = vsel %vm37_vm0, %v2685_v37, 0.0  ;;  %4115 = vmatprep.subr.bf16.mxu1 %v4396_v15 }
0x112d   :  { %2692 = vadd.xlane.f32.xlu1 %v2691_v61 }
0x112f   :  { %4116 = vmatpush3.bf16.msra.mxu1 %v4191_v39 }
0x11b8   :  { %v2690_v50 = vpop.xlane.xlu0 %2689 }
0x11b9   :  { %v2694_v42 = vmul.f32 0.03125, %v2690_v50 }
0x11ba   :  { %v2693_v51 = vpop.xlane.xlu1 %2692 }
0x11bb   :  { %v2696_v28 = vsub.f32 %v2684_v34, %v2694_v42  ;;  %v2695_v27 = vmul.f32 0.03125, %v2693_v51 }
0x11bd   :  { %v2697_v30 = vsub.f32 %v2685_v37, %v2695_v27  ;;  %v2698_v29 = vmul.f32 %v2696_v28, %v2696_v28 }
0x11bf   :  { %v2700_v36 = vsel %vm37_vm0, %v2698_v29, 0.0  ;;  %v2699_v38 = vmul.f32 %v2697_v30, %v2697_v30 }
0x11c0   :  { %2701 = vadd.xlane.f32.xlu0 %v2700_v36 }
0x11c1   :  { %v2703_v59 = vsel %vm37_vm0, %v2699_v38, 0.0 }
0x11c4   :  { %2704 = vadd.xlane.f32.xlu0 %v2703_v59 }
0x124d   :  { %v2702_v40 = vpop.xlane.xlu0 %2701 }
0x124e   :  { %v2706_v43 = vmul.f32 0.03125, %v2702_v40 }
0x1250   :  { %v2708_v55 = vadd.f32 1e-05, %v2706_v43 }
0x1251   :  { %v2705_v16 = vpop.xlane.xlu0 %2704 }
0x1252   :  { %4384 = vrsqrt.f32 %v2708_v55  ;;  %v2707_v9 = vmul.f32 0.03125, %v2705_v16 }
0x1254   :  { %v2709_v45 = vadd.f32 1e-05, %v2707_v9 }
0x1256   :  { %4386 = vrsqrt.f32 %v2709_v45 }
0x125c   :  { %v4385_v41 = vpop.eup %4384 }
0x125d   :  { %v2712_v25 = vmul.f32 %v4385_v41, %v2696_v28  ;;  %v4198_v41 = vld [vmem:[%s5385_s7 + $0x4] ss:$16 sps:$4 sm:$0xff]  }
0x125e   :  { %2987 = vmatprep.subr.bf16.mxu1 %v4198_v41  ;;  %v4240_v41 = vld [vmem:[%s5386_s8 + $0x64] ss:$8 sps:$4 sm:$0xff]  }
0x125f   :  { %v2714_v48 = vmul.f32 %v2712_v25, %v2686_v46  ;;  %v4196_v25 = vld [vmem:[%s5385_s7] ss:$16 sps:$4 sm:$0xff]  }
0x1260   :  { %v4387_v47 = vpop.eup %4386 }
0x1261   :  { %v2713_v52 = vmul.f32 %v4387_v47, %v2697_v30  ;;  %v2716_v53 = vadd.f32 %v2714_v48, %v2687_v44  ;;  %v4199_v47 = vld [vmem:[%s5385_s7 + $0x20] ss:$16 sps:$4 sm:$0xff]   ;;  %v4404_v48 = vmov 0  }
0x1263   :  { %v2715_v14 = vmul.f32 %v2713_v52, %v2686_v46  ;;  %v4201_v46 = vld [vmem:[%s5385_s7 + $0x24] ss:$16 sps:$4 sm:$0xff]   ;;  %v4204_v52 = vld [vmem:[%s5385_s7 + $0xc] ss:$16 sps:$4 sm:$0xff]  }
0x1265   :  { %v2717_v56 = vadd.f32 %v2715_v14, %v2687_v44  ;;  %v4217_v44 = vld [vmem:[%s5386_s8 + $0x100] ss:$8 sps:$4 sm:$0xff]   ;;  %v4219_v14 = vld [vmem:[%s5386_s8 + $0x104] ss:$8 sps:$4 sm:$0xff]  }
0x1266   :  { %3525 = vmatprep.subr.bf16.mxu0 %v4219_v14  ;;  %v4256_v14 = vld [vmem:[%s5386_s8 + $0x90] ss:$8 sps:$4 sm:$0xff]  }
0x1267   :  { %v2718_v49 = vpack.c.bf16 %v2717_v56, %v2716_v53 }
0x1269   :  { %4118 = vmatmul.mubr.msk.bf16.vlgmr.msra.gmra.mrb[88].mxu1 %vm37_vm0, %v2718_v49  ;;  %v4229_v49 = vld [vmem:[%s5386_s8 + $0x120] ss:$8 sps:$4 sm:$0xff]  }
0x126a   :  { %2988 = vmatpush1.bf16.msra.mxu1 %v4196_v25  ;;  %3019 = vmatprep.mubr.bf16.mxu1 %v4404_v48  ;;  %v4238_v25 = vld [vmem:[%s5386_s8 + $0x60] ss:$8 sps:$4 sm:$0xff]  }
0x126b   :  { %2989 = vmatprep.subr.bf16.mxu1 %v4201_v46  ;;  %v4246_v46 = vld [vmem:[%s5386_s8 + $0x74] ss:$8 sps:$4 sm:$0xff]  }
0x126e   :  { %2990 = vmatpush1.bf16.msra.mxu1 %v4199_v47  ;;  %v4244_v47 = vld [vmem:[%s5386_s8 + $0x70] ss:$8 sps:$4 sm:$0xff]  }
0x126f   :  { %3030 = vmatprep.subr.bf16.mxu1 %v4204_v52  ;;  %v4250_v52 = vld [vmem:[%s5386_s8 + $0x80] ss:$8 sps:$4 sm:$0xff]  }
0x133c   :  { %v2774_v58 = vpop.f32.mrb[88].mxu1 }
0x133d   :  { %v2775_v2 = vadd.f32 %v2774_v58, %v2724_v1  ;;  %v4119_v3 = vpop.f32.mrb[89].mxu1  ;;  %v4247_v58 = vld [vmem:[%s5386_s8 + $0x150] ss:$8 sps:$4 sm:$0xff]  }
0x133e   :  { %v2777_v4 = vpop.f32.mrb[90].mxu1  ;;  %v4253_v3 = vld [vmem:[%s5386_s8 + $0x160] ss:$8 sps:$4 sm:$0xff]  }
0x133f   :  { %v2781_v5 = vmul.f32 %v2775_v2, %v2775_v2  ;;  %v2778_v6 = vadd.f32 %v2777_v4, %v2724_v1  ;;  %v4120_v7 = vpop.f32.mrb[91].mxu1  ;;  %v4243_v1 = vld [vmem:[%s5386_s8 + $0x144] ss:$8 sps:$4 sm:$0xff]  }
0x1340   :  { %v4255_v4 = vld [vmem:[%s5386_s8 + $0x164] ss:$8 sps:$4 sm:$0xff]   ;;  %v4265_v7 = vld [vmem:[%s5386_s8 + $0x180] ss:$8 sps:$4 sm:$0xff]  }
0x1341   :  { %v2783_v8 = vmul.f32 %v2781_v5, %v2775_v2  ;;  %v2782_v10 = vmul.f32 %v2778_v6, %v2778_v6  ;;  %v4259_v5 = vld [vmem:[%s5386_s8 + $0x170] ss:$8 sps:$4 sm:$0xff]  }
0x1343   :  { %v2785_v62 = vmul.f32 0.044715, %v2783_v8  ;;  %v2784_v15 = vmul.f32 %v2782_v10, %v2778_v6  ;;  %v4267_v8 = vld [vmem:[%s5386_s8 + $0x184] ss:$8 sps:$4 sm:$0xff]   ;;  %v4271_v10 = vld [vmem:[%s5386_s8 + $0x190] ss:$8 sps:$4 sm:$0xff]  }
0x1345   :  { %v2787_v11 = vadd.f32 %v2785_v62, %v2775_v2  ;;  %v2786_v12 = vmul.f32 0.044715, %v2784_v15  ;;  %v4273_v62 = vld [vmem:[%s5386_s8 + $0x194] ss:$8 sps:$4 sm:$0xff]   ;;  %v4277_v15 = vld [vmem:[%s5386_s8 + $0x1a0] ss:$8 sps:$4 sm:$0xff]  }
0x1347   :  { %v2789_v13 = vmul.f32 0.7978846, %v2787_v11  ;;  %v2788_v17 = vadd.f32 %v2786_v12, %v2778_v6  ;;  %v4279_v11 = vld [vmem:[%s5386_s8 + $0x1a4] ss:$8 sps:$4 sm:$0xff]   ;;  %v4283_v12 = vld [vmem:[%s5386_s8 + $0x1b0] ss:$8 sps:$4 sm:$0xff]  }
0x1349   :  { %4388 = vtanh.f32 %v2789_v13  ;;  %v2790_v21 = vmul.f32 0.7978846, %v2788_v17  ;;  %v4285_v13 = vld [vmem:[%s5386_s8 + $0x1b4] ss:$8 sps:$4 sm:$0xff]  }
0x134b   :  { %4390 = vtanh.f32 %v2790_v21 }
0x1353   :  { %v4389_v22 = vpop.eup %4388 }
0x1354   :  { %v2793_v24 = vadd.f32 1.0, %v4389_v22 }
0x1355   :  { %v4391_v26 = vpop.eup %4390 }
0x1356   :  { %v2795_v33 = vmul.f32 0.5, %v2793_v24  ;;  %v2794_v20 = vadd.f32 1.0, %v4391_v26 }
0x1358   :  { %v2796_v63 = vmul.f32 0.5, %v2794_v20  ;;  %v2797_v31 = vmul.f32 %v2795_v33, %v2775_v2  ;;  %v4249_v2 = vld [vmem:[%s5386_s8 + $0x154] ss:$8 sps:$4 sm:$0xff]  }
0x135a   :  { %v2798_v32 = vmul.f32 %v2796_v63, %v2778_v6  ;;  %v4261_v6 = vld [vmem:[%s5386_s8 + $0x174] ss:$8 sps:$4 sm:$0xff]   ;;  %v2880_v63 = vld [vmem:[%s5380_s2 + $0x40] ss:$0 sm:$0xff] }
0x135c   :  { %v2799_v34 = vpack.c.bf16 %v2798_v32, %v2797_v31 }
0x135e   :  { %4130 = vmatmul.mubr.msk.bf16.vlgmr.msra.gmra.mrb[88].mxu0 %vm1428_vm4, %v2799_v34 }
0x135f   :  { %3526 = vmatpush1.bf16.msra.mxu0 %v4217_v44  ;;  %v4258_v44 = vld [vmem:[%s5386_s8 + $0x94] ss:$8 sps:$4 sm:$0xff]  }
0x1431   :  { %v2871_v37 = vpop.f32.mrb[88].mxu0 }
0x1432   :  { %v2872_v61 = vadd.f32 %v2871_v37, %v2809_v35  ;;  %v4131_v50 = vpop.f32.mrb[89].mxu0  ;;  %v2881_v37 = vld [vmem:[%s5380_s2 + $0x41] ss:$0 sm:$0xff] }
0x1433   :  { %v2874_v42 = vpop.f32.mrb[90].mxu0 }
0x1434   :  { %v2875_v51 = vadd.f32 %v2874_v42, %v2809_v35  ;;  %v4132_v28 = vpop.f32.mrb[91].mxu0  ;;  %v2878_v27 = vadd.f32 %v2872_v61, %v2716_v53  ;;  %v4223_v53 = vld [vmem:[%s5386_s8 + $0x110] ss:$8 sps:$4 sm:$0xff]  }
0x1436   :  { %v2882_v30 = vsel %vm37_vm0, %v2878_v27, 0.0  ;;  %v2879_v29 = vadd.f32 %v2875_v51, %v2717_v56  ;;  %v4225_v56 = vld [vmem:[%s5386_s8 + $0x114] ss:$8 sps:$4 sm:$0xff]   ;;  %v4202_v51 = vld [vmem:[%s5385_s7 + $0x8] ss:$16 sps:$4 sm:$0xff]  }
0x1437   :  { %2883 = vadd.xlane.f32.xlu0 %v2882_v30  ;;  %3527 = vmatprep.subr.bf16.mxu0 %v4225_v56  ;;  %v4205_v30 = vld [vmem:[%s5385_s7 + $0x28] ss:$16 sps:$4 sm:$0xff]  }
0x1438   :  { %v2885_v36 = vsel %vm37_vm0, %v2879_v29, 0.0  ;;  %3528 = vmatpush1.bf16.msra.mxu0 %v4223_v53  ;;  %v4264_v53 = vld [vmem:[%s5386_s8 + $0xa4] ss:$8 sps:$4 sm:$0xff]   ;;  %v4262_v56 = vld [vmem:[%s5386_s8 + $0xa0] ss:$8 sps:$4 sm:$0xff]  }
0x1439   :  { %2886 = vadd.xlane.f32.xlu1 %v2885_v36  ;;  %3529 = vmatprep.subr.bf16.mxu0 %v4231_v54  ;;  %v4208_v36 = vld [vmem:[%s5386_s8] ss:$8 sps:$4 sm:$0xff]   ;;  %v4268_v54 = vld [vmem:[%s5386_s8 + $0xb0] ss:$8 sps:$4 sm:$0xff]  }
0x143c   :  { %3530 = vmatpush1.bf16.msra.mxu0 %v4229_v49  ;;  %v4270_v49 = vld [vmem:[%s5386_s8 + $0xb4] ss:$8 sps:$4 sm:$0xff]  }
0x143d   :  { %3531 = vmatprep.subr.bf16.mxu0 %v4237_v0  ;;  %v4274_v0 = vld [vmem:[%s5386_s8 + $0xc0] ss:$8 sps:$4 sm:$0xff]  }
0x1440   :  { %3532 = vmatpush1.bf16.msra.mxu0 %v4235_v57  ;;  %v4276_v57 = vld [vmem:[%s5386_s8 + $0xc4] ss:$8 sps:$4 sm:$0xff]  }
0x1441   :  { %3533 = vmatprep.subr.bf16.mxu0 %v4243_v1  ;;  %v4280_v1 = vld [vmem:[%s5386_s8 + $0xd0] ss:$8 sps:$4 sm:$0xff]  }
0x1444   :  { %3534 = vmatpush1.bf16.msra.mxu0 %v4241_v19  ;;  %v4282_v19 = vld [vmem:[%s5386_s8 + $0xd4] ss:$8 sps:$4 sm:$0xff]  }
0x1445   :  { %3535 = vmatprep.subr.bf16.mxu0 %v4249_v2  ;;  %v4291_v2 = vld [vmem:[%s5386_s8 + $0x1c4] ss:$8 sps:$4 sm:$0xff]  }
0x1448   :  { %3536 = vmatpush1.bf16.msra.mxu0 %v4247_v58  ;;  %v4288_v58 = vld [vmem:[%s5386_s8 + $0xe4] ss:$8 sps:$4 sm:$0xff]  }
0x1449   :  { %3537 = vmatprep.subr.bf16.mxu0 %v4255_v4  ;;  %v4289_v4 = vld [vmem:[%s5386_s8 + $0x1c0] ss:$8 sps:$4 sm:$0xff]  }
0x144c   :  { %3538 = vmatpush1.bf16.msra.mxu0 %v4253_v3  ;;  %v4286_v3 = vld [vmem:[%s5386_s8 + $0xe0] ss:$8 sps:$4 sm:$0xff]  }
0x144d   :  { %3539 = vmatprep.subr.bf16.mxu0 %v4261_v6  ;;  %v4297_v6 = vld [vmem:[%s5386_s8 + $0x1d4] ss:$8 sps:$4 sm:$0xff]  }
0x1450   :  { %3540 = vmatpush1.bf16.msra.mxu0 %v4259_v5  ;;  %v4294_v5 = vld [vmem:[%s5386_s8 + $0xf4] ss:$8 sps:$4 sm:$0xff]  }
0x1451   :  { %3541 = vmatprep.subr.bf16.mxu0 %v4267_v8  ;;  %v4295_v8 = vld [vmem:[%s5386_s8 + $0x1d0] ss:$8 sps:$4 sm:$0xff]  }
0x1454   :  { %3542 = vmatpush1.bf16.msra.mxu0 %v4265_v7  ;;  %v4292_v7 = vld [vmem:[%s5386_s8 + $0xf0] ss:$8 sps:$4 sm:$0xff]  }
0x1455   :  { %3543 = vmatprep.subr.bf16.mxu0 %v4273_v62  ;;  %v4298_v62 = vld [vmem:[%s5386_s8 + $0x1e0] ss:$8 sps:$4 sm:$0xff]  }
0x1458   :  { %3544 = vmatpush1.bf16.msra.mxu0 %v4271_v10  ;;  %v4300_v10 = vld [vmem:[%s5386_s8 + $0x1e4] ss:$8 sps:$4 sm:$0xff]  }
0x1459   :  { %3545 = vmatprep.subr.bf16.mxu0 %v4279_v11  ;;  %v4301_v11 = vld [vmem:[%s5386_s8 + $0x1f0] ss:$8 sps:$4 sm:$0xff]  }
0x145c   :  { %3546 = vmatpush1.bf16.msra.mxu0 %v4277_v15  ;;  %v4303_v15 = vld [vmem:[%s5386_s8 + $0x1f4] ss:$8 sps:$4 sm:$0xff]  }
0x145d   :  { %3547 = vmatprep.subr.bf16.mxu0 %v4285_v13  ;;  %v2930_v13 = vsub.s32 1, %v4579_v18 }
0x1460   :  { %3548 = vmatpush1.bf16.msra.mxu0 %v4283_v12  ;;  %v3659_v12 = vld [vmem:[%s5380_s2 + $0x42] ss:$8 sm:$0xf] }
0x1461   :  { %3549 = vmatprep.subr.bf16.mxu0 %v4291_v2 }
0x1464   :  { %3550 = vmatpush1.bf16.msra.mxu0 %v4289_v4 }
0x1465   :  { %3551 = vmatprep.subr.bf16.mxu0 %v4297_v6 }
0x1468   :  { %3552 = vmatpush1.bf16.msra.mxu0 %v4295_v8 }
0x1469   :  { %3553 = vmatprep.subr.bf16.mxu0 %v4300_v10 }
0x146c   :  { %3554 = vmatpush1.bf16.msra.mxu0 %v4298_v62 }
0x146d   :  { %3555 = vmatprep.subr.bf16.mxu0 %v4303_v15 }
0x1470   :  { %3556 = vmatpush1.bf16.msra.mxu0 %v4301_v11 }
0x14c4   :  { %v2884_v38 = vpop.xlane.xlu0 %2883 }
0x14c5   :  { %v2888_v59 = vmul.f32 0.03125, %v2884_v38  ;;  %v4213_v38 = vld [vmem:[%s5386_s8 + $0x14] ss:$8 sps:$4 sm:$0xff]  }
0x14c6   :  { %v2887_v60 = vpop.xlane.xlu1 %2886 }
0x14c7   :  { %v5117_v39 = vsub.f32 %v2878_v27, %v2888_v59  ;;  %v2889_v40 = vmul.f32 0.03125, %v2887_v60  ;;  %v4207_v27 = vld [vmem:[%s5385_s7 + $0x2c] ss:$16 sps:$4 sm:$0xff]   ;;  %v4211_v59 = vld [vmem:[%s5386_s8 + $0x10] ss:$8 sps:$4 sm:$0xff]  }
0x14c8   :  { %v4216_v60 = vld [vmem:[%s5386_s8 + $0x24] ss:$8 sps:$4 sm:$0xff]  }
0x14c9   :  { %v5119_v43 = vsub.f32 %v2879_v29, %v2889_v40  ;;  %v2892_v55 = vmul.f32 %v5117_v39, %v5117_v39  ;;  %v4210_v29 = vld [vmem:[%s5386_s8 + $0x4] ss:$8 sps:$4 sm:$0xff]   ;;  %v4222_v40 = vld [vmem:[%s5386_s8 + $0x34] ss:$8 sps:$4 sm:$0xff]  }
0x14cb   :  { %v2894_v16 = vsel %vm37_vm0, %v2892_v55, 0.0  ;;  %v2893_v9 = vmul.f32 %v5119_v43, %v5119_v43  ;;  %v4228_v55 = vld [vmem:[%s5386_s8 + $0x44] ss:$8 sps:$4 sm:$0xff]  }
0x14cc   :  { %2895 = vadd.xlane.f32.xlu0 %v2894_v16  ;;  %v4226_v16 = vld [vmem:[%s5386_s8 + $0x40] ss:$8 sps:$4 sm:$0xff]  }
0x14cd   :  { %v2897_v45 = vsel %vm37_vm0, %v2893_v9, 0.0  ;;  %v4234_v9 = vld [vmem:[%s5386_s8 + $0x54] ss:$8 sps:$4 sm:$0xff]  }
0x14ce   :  { %2898 = vadd.xlane.f32.xlu1 %v2897_v45  ;;  %v4232_v45 = vld [vmem:[%s5386_s8 + $0x50] ss:$8 sps:$4 sm:$0xff]  }
0x1559   :  { %v2896_v17 = vpop.xlane.xlu0 %2895 }
0x155a   :  { %v2900_v21 = vmul.f32 0.03125, %v2896_v17  ;;  %v2927_v17 = vrot.slane %v3659_v12, %v4586_v23 }
0x155b   :  { %v2899_v22 = vpop.xlane.xlu1 %2898 }
0x155c   :  { %v2902_v24 = vadd.f32 1e-05, %v2900_v21  ;;  %v2901_v26 = vmul.f32 0.03125, %v2899_v22  ;;  %v2931_v21 = vrot.slane %v3659_v12, %v2930_v13 }
0x155e   :  { %4392 = vrsqrt.f32 %v2902_v24  ;;  %v2903_v33 = vadd.f32 1e-05, %v2901_v26 }
0x1560   :  { %4394 = vrsqrt.f32 %v2903_v33  ;;  %v2934_v33 = vsub.s32 2, %v4579_v18 }
0x1568   :  { %v4393_v20 = vpop.eup %4392 }
0x1569   :  { %v2906_v31 = vmul.f32 %v4393_v20, %v5117_v39  ;;  %v4214_v39 = vld [vmem:[%s5386_s8 + $0x20] ss:$8 sps:$4 sm:$0xff]  }
0x156a   :  { %v4395_v32 = vpop.eup %4394 }
0x156b   :  { %v2908_v34 = vmul.f32 %v2906_v31, %v2880_v63  ;;  %v2907_v35 = vmul.f32 %v4395_v32, %v5119_v43  ;;  %v4220_v43 = vld [vmem:[%s5386_s8 + $0x30] ss:$8 sps:$4 sm:$0xff]   ;;  %v2938_v31 = vsub.s32 3, %v4579_v18 }
0x156d   :  { %v2909_v61 = vmul.f32 %v2907_v35, %v2880_v63  ;;  %v2910_v50 = vadd.f32 %v2908_v34, %v2881_v37 }
0x156f   :  { %v2911_v42 = vadd.f32 %v2909_v61, %v2881_v37 }
0x1571   :  { %v2912_v28 = vpack.c.bf16 %v2911_v42, %v2910_v50  ;;  %v2935_v50 = vrot.slane %v3659_v12, %v2934_v33 }
0x1573   :  { %3668 = vmatmul.mubr.msk.bf16.vlgmr.msra.gmra.mrb[92].mxu1 %vm37_vm0, %v2912_v28 }
0x1574   :  { %3031 = vmatpush1.bf16.msra.mxu1 %v4202_v51  ;;  %3062 = vmatprep.mubr.bf16.mxu1 %v4404_v48  ;;  %v4252_v48 = vld [vmem:[%s5386_s8 + $0x84] ss:$8 sps:$4 sm:$0xff]  }
0x1575   :  { %3032 = vmatprep.subr.bf16.mxu1 %v4207_v27 }
0x1578   :  { %3033 = vmatpush1.bf16.msra.mxu1 %v4205_v30 }
0x1579   :  { %3482 = vmatprep.subr.bf16.mxu1 %v4210_v29 }
0x157b   :  { %3669 = vmatmul.mubr.msk.bf16.vlgmr.msra.gmra.mrb[96].mxu1 %vm37_vm0, %v2912_v28  ;;  %v2939_v28 = vrot.slane %v3659_v12, %v2938_v31 }
0x157c   :  { %3483 = vmatpush1.bf16.msra.mxu1 %v4208_v36 }
0x157d   :  { %3484 = vmatprep.subr.bf16.mxu1 %v4213_v38 }
0x1580   :  { %3485 = vmatpush1.bf16.msra.mxu1 %v4211_v59 }
0x1581   :  { %3486 = vmatprep.subr.bf16.mxu1 %v4216_v60 }
0x1584   :  { %3487 = vmatpush1.bf16.msra.mxu1 %v4214_v39 }
0x1585   :  { %3488 = vmatprep.subr.bf16.mxu1 %v4222_v40 }
0x1588   :  { %3489 = vmatpush1.bf16.msra.mxu1 %v4220_v43 }
0x1589   :  { %3490 = vmatprep.subr.bf16.mxu1 %v4228_v55 }
0x158c   :  { %3491 = vmatpush1.bf16.msra.mxu1 %v4226_v16 }
0x158d   :  { %3492 = vmatprep.subr.bf16.mxu1 %v4234_v9 }
0x1590   :  { %3493 = vmatpush1.bf16.msra.mxu1 %v4232_v45 }
0x1591   :  { %3494 = vmatprep.subr.bf16.mxu1 %v4240_v41 }
0x1594   :  { %3495 = vmatpush1.bf16.msra.mxu1 %v4238_v25  ;;  %v3670_v25 = vld [vmem:[%s5380_s2 + $0x43] ss:$8 sm:$0x3] }
0x1595   :  { %3496 = vmatprep.subr.bf16.mxu1 %v4246_v46 }
0x1598   :  { %3497 = vmatpush1.bf16.msra.mxu1 %v4244_v47 }
0x1599   :  { %3498 = vmatprep.subr.bf16.mxu1 %v4252_v48 }
0x159c   :  { %3499 = vmatpush1.bf16.msra.mxu1 %v4250_v52  ;;  %v3155_v52 = vrot.slane %v3670_v25, %v4586_v23 }
0x159d   :  { %3500 = vmatprep.subr.bf16.mxu1 %v4258_v44 }
0x15a0   :  { %3501 = vmatpush1.bf16.msra.mxu1 %v4256_v14  ;;  %v3159_v14 = vrot.slane %v3670_v25, %v2930_v13 }
0x15a1   :  { %3502 = vmatprep.subr.bf16.mxu1 %v4264_v53 }
0x15a4   :  { %3503 = vmatpush1.bf16.msra.mxu1 %v4262_v56 }
0x15a5   :  { %3504 = vmatprep.subr.bf16.mxu1 %v4270_v49 }
0x15a8   :  { %3505 = vmatpush1.bf16.msra.mxu1 %v4268_v54 }
0x15a9   :  { %3506 = vmatprep.subr.bf16.mxu1 %v4276_v57 }
0x15ac   :  { %3507 = vmatpush1.bf16.msra.mxu1 %v4274_v0 }
0x15ad   :  { %3508 = vmatprep.subr.bf16.mxu1 %v4282_v19 }
0x15b0   :  { %3509 = vmatpush1.bf16.msra.mxu1 %v4280_v1 }
0x15b1   :  { %3510 = vmatprep.subr.bf16.mxu1 %v4288_v58 }
0x15b4   :  { %3511 = vmatpush1.bf16.msra.mxu1 %v4286_v3 }
0x15b5   :  { %3512 = vmatprep.subr.bf16.mxu1 %v4294_v5 }
0x15b8   :  { %3513 = vmatpush1.bf16.msra.mxu1 %v4292_v7 }
0x1646   :  { %v3021_v22 = vpop.f32.mrb[92].mxu1 }
0x1647   :  { %v3022_v24 = vadd.f32 %v3021_v22, %v2927_v17  ;;  %v3023_v26 = vpop.f32.mrb[93].mxu1 }
0x1648   :  { %v3024_v20 = vadd.f32 %v3023_v26, %v2931_v21  ;;  %v3025_v63 = vpop.f32.mrb[94].mxu1 }
0x1649   :  { %v3026_v32 = vadd.f32 %v3025_v63, %v2927_v17  ;;  %v3027_v34 = vpop.f32.mrb[95].mxu1  ;;  %v3073_v37 = vmax.f32 %v3022_v24, 0.0 }
0x164a   :  { %v3028_v35 = vadd.f32 %v3027_v34, %v2931_v21  ;;  %v3074_v42 = vmax.f32 %v3024_v20, 0.0 }
0x164b   :  { %v3077_v61 = vmax.f32 %v3026_v32, 0.0 }
0x164c   :  { %v3078_v51 = vmax.f32 %v3028_v35, 0.0 }
0x164d   :  { %v3081_v27 = vpack.c.bf16 %v3077_v61, %v3073_v37 }
0x164e   :  { %v3082_v30 = vpack.c.bf16 %v3078_v51, %v3074_v42  ;;  %v3064_v29 = vpop.f32.mrb[96].mxu1 }
0x164f   :  { %v3065_v36 = vadd.f32 %v3064_v29, %v2935_v50  ;;  %v3066_v38 = vpop.f32.mrb[97].mxu1 }
0x1650   :  { %v3067_v59 = vadd.f32 %v3066_v38, %v2939_v28  ;;  %v3068_v60 = vpop.f32.mrb[98].mxu1  ;;  %3514 = vmatprep.mubr.bf16.mxu1 %v3082_v30 }
0x1651   :  { %v3069_v39 = vadd.f32 %v3068_v60, %v2935_v50  ;;  %v3070_v40 = vpop.f32.mrb[99].mxu1  ;;  %3515 = vmatmul.mubr.bf16.vlgmr.msra.gmra.mrb[100].mxu1 %v3081_v27  ;;  %v3075_v43 = vmax.f32 %v3065_v36, 0.0 }
0x1652   :  { %v3071_v18 = vadd.f32 %v3070_v40, %v2939_v28  ;;  %v3076_v16 = vmax.f32 %v3067_v59, 0.0 }
0x1653   :  { %v3079_v55 = vmax.f32 %v3069_v39, 0.0 }
0x1654   :  { %v3080_v9 = vmax.f32 %v3071_v18, 0.0 }
0x1655   :  { %v3083_v45 = vpack.c.bf16 %v3079_v55, %v3075_v43 }
0x1656   :  { %v3084_v41 = vpack.c.bf16 %v3080_v9, %v3076_v16 }
0x1658   :  { %3557 = vmatprep.mubr.bf16.mxu0 %v3084_v41 }
0x1659   :  { %3558 = vmatmul.mubr.bf16.vlgmr.msra.gmra.mrb[92].mxu0 %v3083_v45 }
0x1724   :  { %v3516_v46 = vpop.f32.mrb[100].mxu1 }
0x1725   :  { %v3518_v47 = vpop.f32.mrb[101].mxu1  ;;  %v3517_v53 = vadd.f32 %v3516_v46, %v3155_v52 }
0x1726   :  { %v3520_v48 = vpop.f32.mrb[102].mxu1  ;;  %v3519_v56 = vadd.f32 %v3518_v47, %v3159_v14 }
0x1727   :  { %v3522_v44 = vpop.f32.mrb[103].mxu1  ;;  %v3521_v54 = vadd.f32 %v3520_v48, %v3155_v52 }
0x1728   :  { %v3523_v19 = vadd.f32 %v3522_v44, %v3159_v14 }
0x172c   :  { %v3559_v49 = vpop.f32.mrb[92].mxu0 }
0x172d   :  { %v3560_v57 = vadd.f32 %v3559_v49, %v3517_v53  ;;  %v3561_v0 = vpop.f32.mrb[93].mxu0 }
0x172e   :  { %v3562_v1 = vadd.f32 %v3561_v0, %v3519_v56  ;;  %v3563_v58 = vpop.f32.mrb[94].mxu0 }
0x172f   :  { %3568 = vst [vmem:[%s5387_s9] sm:$0xff] %v3560_v57  ;;  %v3564_v2 = vadd.f32 %v3563_v58, %v3521_v54  ;;  %v3565_v3 = vpop.f32.mrb[95].mxu0 }
0x1730   :  { %3569 = vst [vmem:[%s5387_s9 + $0x8] sm:$0xff] %v3562_v1  ;;  %v3566_v23 = vadd.f32 %v3565_v3, %v3523_v19 }
0x1731   :  { %3570 = vst [vmem:[%s5387_s9 + $0x10] sm:$0xff] %v3564_v2 }
0x1732   :  { %3571 = vst [vmem:[%s5387_s9 + $0x18] sm:$0xff] %v3566_v23 }

</bundles_post_ra>
